<compile_context>
chip_gen: v5e
topology: v5e:2x2
jax: 0.10.0
libtpu: 0.0.40
codegen_flags: <defaults>
</compile_context>

<pallas_src>
import functools

import jax
import jax.numpy as jnp
from jax import lax
from jax.experimental import pallas as pl
from jax.experimental.pallas import tpu as pltpu

LANE = 128  # TPU lane width; hidden channel dims are padded to this in VMEM.


# ---------------------------------------------------------------------------
# Fused Pallas kernel: all TCN layers for one batch tile
# ---------------------------------------------------------------------------
def _tcn_fused_kernel(x_ref, w_ref, b_ref, o_ref, act_a, act_b, *,
                      seq_len, max_pad, dilations, kernel_size,
                      in_channels, out_channels, compute_dtype):
    """x_ref : [Bt, S, C_in]           input (real channels only)
       w_ref : [L, K, CP, CP]          per-layer per-tap weights (zero-padded)
       b_ref : [L, 1, CP]              per-layer biases (zero-padded, f32)
       o_ref : [Bt, S, C_out]          output (real channels only)
       act_a/act_b : [Bt, S + 2*max_pad, CP] ping-pong activation scratch
    """
    bt = x_ref.shape[0]
    cp = act_a.shape[-1]
    n_layers = len(dilations)

    # act_a: full zero.  Needed because (a) its halo rows are the "same"
    # zero padding and (b) its live-band lanes [in_channels:] could hold
    # stale NaN/Inf from a previous kernel (x is not lane-padded in HBM).
    act_a[...] = jnp.zeros(act_a.shape, act_a.dtype)
    # act_b: only the halo rows need zeroing (cheap: 2*max_pad rows).
    if max_pad > 0:
        zero_halo = jnp.zeros((bt, max_pad, cp), act_b.dtype)
        act_b[:, pl.ds(0, max_pad), :] = zero_halo
        act_b[:, pl.ds(max_pad + seq_len, max_pad), :] = zero_halo

    # Deposit the (unpadded) input channels into the live band of A.
    act_a[:, pl.ds(max_pad, seq_len), :in_channels] = (
        x_ref[...].astype(act_a.dtype))

    bufs = (act_a, act_b)
    for i, dil in enumerate(dilations):            # static unroll over layers
        src = bufs[i % 2]
        dst = bufs[(i + 1) % 2]
        pad = (kernel_size - 1) * dil // 2         # odd K only ("same")
        # K narrow accumulating matmuls; each already has a full 128-lane
        # contraction, so MXU efficiency matches the old wide matmul
        # without the K*CP-wide concat copy.
        acc = None
        for k in range(kernel_size):
            win = src[:, pl.ds(max_pad - pad + k * dil, seq_len), :]
            lhs = win.reshape(bt * seq_len, cp)
            if lhs.dtype != compute_dtype:
                lhs = lhs.astype(compute_dtype)
            part = jnp.dot(lhs, w_ref[i, k],
                           preferred_element_type=jnp.float32)
            acc = part if acc is None else acc + part           # f32 accum
        acc = acc.reshape(bt, seq_len, cp) + b_ref[i].astype(jnp.float32)
        if i < n_layers - 1:
            acc = jnp.maximum(acc, 0.0)                         # f32 ReLU
            # TODO(synk): nn.Dropout(0.15) omitted (identity in eval mode).
            dst[:, pl.ds(max_pad, seq_len), :] = acc.astype(dst.dtype)
        else:
            # Only the real output channels are written back to HBM.
            o_ref[...] = acc[:, :, :out_channels].astype(o_ref.dtype)


# ---------------------------------------------------------------------------
# Wrapper: pack params, pick batch tile / VMEM budget, launch fused kernel
# ---------------------------------------------------------------------------
def noise_predictor_tcn_forward(params, noisy_trajectory, forces=None,
                                use_forces=False, batch_tile=None,
                                compute_dtype=jnp.bfloat16):
    """params: list of (w [K, C_in, C_out], b [C_out], dilation int)."""
    if use_forces:
        x = jnp.concatenate([noisy_trajectory, forces], axis=-1)
    else:
        x = noisy_trajectory
    B, S, C_in = x.shape
    L = len(params)
    K = params[0][0].shape[0]
    out_c = params[-1][0].shape[2]
    if K % 2 == 0:
        # torch's padding=(K-1)*dil//2 is only "same" for odd K.
        raise NotImplementedError("even kernel_size not supported")
    dilations = tuple(int(d) for _, _, d in params)
    max_c = max(max(w.shape[1], w.shape[2]) for w, _, _ in params)
    CP = ((max(max_c, C_in) + LANE - 1) // LANE) * LANE
    max_pad = max((K - 1) * d // 2 for d in dilations)

    # Pack weights/biases: zero-pad channels to CP, keep taps as a separate
    # axis ([L, K, CP, CP]) so the kernel can pull one [CP, CP] tile per tap.
    w_list, b_list = [], []
    for (w, b, _d) in params:
        k, ci, co = w.shape
        wp = jnp.zeros((k, CP, CP), jnp.float32).at[:, :ci, :co].set(w)
        w_list.append(wp)
        b_list.append(jnp.zeros((1, CP), jnp.float32).at[0, :co].set(b))
    w_stk = jnp.stack(w_list).astype(compute_dtype)   # [L, K, CP, CP]
    b_stk = jnp.stack(b_list)                         # [L, 1, CP] (f32)

    # --- VMEM-aware batch tile + explicit scoped-VMEM budget ---------------
    comp_bytes = jnp.dtype(compute_dtype).itemsize
    t_rows = S + 2 * max_pad
    # Per-batch-element VMEM: 2 ping-pong scratch slabs (compute dtype) plus
    # double-buffered in/out blocks (narrow channel dims still occupy a full
    # 128-lane tile in VMEM even though HBM traffic is only the real bytes).
    per_b = (2 * t_rows * LANE * comp_bytes          # scratch A + B
             + 2 * 2 * S * LANE * 4)                 # in & out blocks, x2 bufs
    w_bytes = 2 * (w_stk.size * comp_bytes + b_stk.size * 4)
    budget = max((36 << 20) - w_bytes, per_b)
    cap = max(1, budget // max(per_b, 1))
    if batch_tile is None:
        # As large as VMEM comfortably allows (amortizes ~0.35us/step on
        # single-TC v5e/v6e) while keeping >= 2 balanced grid steps so both
        # v7x TensorCores get work.
        batch_tile = int(max(1, min(cap, pl.cdiv(B, 2))))
    Bp = pl.cdiv(B, batch_tile) * batch_tile

    x_p = x if Bp == B else jnp.zeros((Bp, S, C_in), x.dtype).at[:B].set(x)

    needed = batch_tile * per_b + w_bytes
    vmem_limit = int(min(max(needed + (8 << 20), 32 << 20), 48 << 20))

    kern = functools.partial(
        _tcn_fused_kernel, seq_len=S, max_pad=max_pad, dilations=dilations,
        kernel_size=K, in_channels=C_in, out_channels=out_c,
        compute_dtype=compute_dtype)

    out = pl.pallas_call(
        kern,
        out_shape=jax.ShapeDtypeStruct((Bp, S, out_c), jnp.float32),
        grid=(Bp // batch_tile,),
        in_specs=[
            # Real input channels only; last two block dims == full array
            # dims, so the narrow channel dim is legal.
            pl.BlockSpec((batch_tile, S, C_in), lambda bi: (bi, 0, 0)),
            # Constant index maps -> weights/biases stay VMEM-resident and
            # are not re-DMA'd per grid step.
            pl.BlockSpec((L, K, CP, CP), lambda bi: (0, 0, 0, 0)),
            pl.BlockSpec((L, 1, CP), lambda bi: (0, 0, 0)),
        ],
        out_specs=pl.BlockSpec((batch_tile, S, out_c), lambda bi: (bi, 0, 0)),
        scratch_shapes=[
            pltpu.VMEM((batch_tile, t_rows, CP), compute_dtype),
            pltpu.VMEM((batch_tile, t_rows, CP), compute_dtype),
        ],
        compiler_params=pltpu.CompilerParams(
            dimension_semantics=("parallel",),
            vmem_limit_bytes=vmem_limit),
    )(x_p, w_stk, b_stk)

    return out[:B].astype(noisy_trajectory.dtype)


# ---------------------------------------------------------------------------
# Parameter init (deterministic, PyTorch Conv1d default-style uniform bounds)
# ---------------------------------------------------------------------------
def init_params(key, hidden_dim, use_forces=False, num_layers=5, kernel_size=3):
    input_dim = 3 if not use_forces else 6
    params = []
    for i in range(num_layers):
        dilation = 2 ** i
        in_c = input_dim if i == 0 else hidden_dim
        out_c = hidden_dim if i < num_layers - 1 else 3
        key, wk, bk = jax.random.split(key, 3)
        bound = 1.0 / float(in_c * kernel_size) ** 0.5
        # stored as [K, C_in, C_out] (== transpose of torch's [O, I, K])
        w = jax.random.uniform(wk, (kernel_size, in_c, out_c), jnp.float32,
                               -bound, bound)
        b = jax.random.uniform(bk, (out_c,), jnp.float32, -bound, bound)
        params.append((w, b, dilation))
    return params


# ---------------------------------------------------------------------------
# Pure-JAX reference (for correctness check)
# ---------------------------------------------------------------------------
def ref_forward(params, x):
    h = jnp.transpose(x, (0, 2, 1))  # NCW, like torch
    n = len(params)
    for i, (w, b, dil) in enumerate(params):
        K = w.shape[0]
        pad = (K - 1) * dil // 2
        w_oik = jnp.transpose(w, (2, 1, 0))  # [O, I, K]
        h = lax.conv_general_dilated(
            h, w_oik, window_strides=(1,), padding=[(pad, pad)],
            rhs_dilation=(dil,), dimension_numbers=("NCH", "OIH", "NCH"))
        h = h + b[None, :, None]
        if i < n - 1:
            h = jnp.maximum(h, 0.0)
    return jnp.transpose(h, (0, 2, 1))


if __name__ == "__main__":
    B, S, HIDDEN = 2, 16, 32
    key = jax.random.PRNGKey(0)
    key, pk, xk = jax.random.split(key, 3)

    params = init_params(pk, hidden_dim=HIDDEN, use_forces=False,
                         num_layers=5, kernel_size=3)
    noisy_trajectory = jax.random.normal(xk, (B, S, 3), jnp.float32)

    ref = jax.block_until_ready(ref_forward(params, noisy_trajectory))

    # Exactness check with f32 MXU operands.
    fwd_f32 = jax.jit(functools.partial(noise_predictor_tcn_forward, params,
                                        compute_dtype=jnp.float32))
    out_f32 = jax.block_until_ready(fwd_f32(noisy_trajectory))
    assert out_f32.shape == (B, S, 3), out_f32.shape
    err_f32 = float(jnp.max(jnp.abs(out_f32 - ref)))
    assert jnp.allclose(out_f32, ref, atol=1e-3, rtol=1e-3), err_f32

    # Default (bf16 MXU operands, f32 accumulation) performance path.
    fwd_bf16 = jax.jit(functools.partial(noise_predictor_tcn_forward, params))
    out_bf16 = jax.block_until_ready(fwd_bf16(noisy_trajectory))
    assert out_bf16.shape == (B, S, 3), out_bf16.shape
    err_bf16 = float(jnp.max(jnp.abs(out_bf16 - ref)))
    assert bool(jnp.all(jnp.isfinite(out_bf16)))
    assert jnp.allclose(out_bf16, ref, atol=5e-2, rtol=5e-2), err_bf16

    print("KERNEL_OK")
</pallas_src>

<mosaic_0001>
module attributes {stable_mosaic.version = 11 : i64} {
  func.func @_tcn_fused_kernel(%arg0: i32, %arg1: memref<1x16x3xf32, #tpu.memory_space<vmem>>, %arg2: memref<5x3x128x128xf32, #tpu.memory_space<vmem>>, %arg3: memref<5x1x128xf32, #tpu.memory_space<vmem>>, %arg4: memref<1x16x3xf32, #tpu.memory_space<vmem>>, %arg5: memref<1x48x128xf32, #tpu.memory_space<vmem>>, %arg6: memref<1x48x128xf32, #tpu.memory_space<vmem>>) attributes {dimension_semantics = [#tpu.dimension_semantics<parallel>], iteration_bounds = array<i64: 2>, scalar_prefetch = 0 : i64, scratch_operands = 2 : i64, tpu.core_type = #tpu.core_type<tc>, window_params = [{transform_indices = @transform_0, window_bounds = array<i64: 1, 16, 3>}, {pipeline_mode = #tpu.pipeline_mode<synchronous>, transform_indices = @transform_1, window_bounds = array<i64: 5, 3, 128, 128>}, {pipeline_mode = #tpu.pipeline_mode<synchronous>, transform_indices = @transform_2, window_bounds = array<i64: 5, 1, 128>}, {transform_indices = @transform_3, window_bounds = array<i64: 1, 16, 3>}]} {
    %cst = arith.constant 0.000000e+00 : f32
    %0 = vector.broadcast %cst : f32 to vector<1x48x128xf32>
    %c0 = arith.constant 0 : index
    %c0_0 = arith.constant 0 : index
    %c0_1 = arith.constant 0 : index
    %1 = vector.load %arg5[%c0, %c0_0, %c0_1] : memref<1x48x128xf32, #tpu.memory_space<vmem>>, vector<1x48x128xf32>
    tpu.vector_store %arg5[%c0, %c0_0, %c0_1], %0 {strides = array<i32>} : memref<1x48x128xf32, #tpu.memory_space<vmem>>, vector<1x48x128xf32>,
    %cst_2 = arith.constant 0.000000e+00 : f32
    %2 = vector.broadcast %cst_2 : f32 to vector<1x16x128xf32>
    %c0_3 = arith.constant 0 : index
    %c0_4 = arith.constant 0 : index
    %c0_5 = arith.constant 0 : index
    %3 = vector.load %arg6[%c0_3, %c0_4, %c0_5] : memref<1x48x128xf32, #tpu.memory_space<vmem>>, vector<1x16x128xf32>
    tpu.vector_store %arg6[%c0_3, %c0_4, %c0_5], %2 {strides = array<i32>} : memref<1x48x128xf32, #tpu.memory_space<vmem>>, vector<1x16x128xf32>,
    %c0_6 = arith.constant 0 : index
    %c32 = arith.constant 32 : index
    %c0_7 = arith.constant 0 : index
    %4 = vector.load %arg6[%c0_6, %c32, %c0_7] : memref<1x48x128xf32, #tpu.memory_space<vmem>>, vector<1x16x128xf32>
    tpu.vector_store %arg6[%c0_6, %c32, %c0_7], %2 {strides = array<i32>} : memref<1x48x128xf32, #tpu.memory_space<vmem>>, vector<1x16x128xf32>,
    %c0_8 = arith.constant 0 : index
    %c0_9 = arith.constant 0 : index
    %c0_10 = arith.constant 0 : index
    %5 = vector.load %arg1[%c0_8, %c0_9, %c0_10] : memref<1x16x3xf32, #tpu.memory_space<vmem>>, vector<1x16x3xf32>
    %c0_11 = arith.constant 0 : index
    %c16 = arith.constant 16 : index
    %c0_12 = arith.constant 0 : index
    %6 = vector.load %arg5[%c0_11, %c16, %c0_12] : memref<1x48x128xf32, #tpu.memory_space<vmem>>, vector<1x16x3xf32>
    tpu.vector_store %arg5[%c0_11, %c16, %c0_12], %5 {strides = array<i32>} : memref<1x48x128xf32, #tpu.memory_space<vmem>>, vector<1x16x3xf32>,
    %c0_13 = arith.constant 0 : index
    %c15 = arith.constant 15 : index
    %c0_14 = arith.constant 0 : index
    %7 = vector.load %arg5[%c0_13, %c15, %c0_14] : memref<1x48x128xf32, #tpu.memory_space<vmem>>, vector<1x16x128xf32>
    %8 = vector.shape_cast %7 : vector<1x16x128xf32> to vector<16x128xf32>
    %c0_15 = arith.constant 0 : index
    %c0_16 = arith.constant 0 : index
    %c0_17 = arith.constant 0 : index
    %c0_18 = arith.constant 0 : index
    %9 = vector.load %arg2[%c0_15, %c0_16, %c0_17, %c0_18] : memref<5x3x128x128xf32, #tpu.memory_space<vmem>>, vector<1x1x128x128xf32>
    %10 = vector.shape_cast %9 : vector<1x1x128x128xf32> to vector<128x128xf32>
    %cst_19 = arith.constant dense<0.000000e+00> : vector<16x128xf32>
    %11 = tpu.matmul %8, %10, %cst_19 {dimension_numbers = #tpu.dot_dimension_numbers<[1], [0], [0], [1], [0, 0, 1, 1], [], []>} : vector<16x128xf32>, vector<128x128xf32>, vector<16x128xf32> -> vector<16x128xf32>
    %c0_20 = arith.constant 0 : index
    %c16_21 = arith.constant 16 : index
    %c0_22 = arith.constant 0 : index
    %12 = vector.load %arg5[%c0_20, %c16_21, %c0_22] : memref<1x48x128xf32, #tpu.memory_space<vmem>>, vector<1x16x128xf32>
    %13 = vector.shape_cast %12 : vector<1x16x128xf32> to vector<16x128xf32>
    %c0_23 = arith.constant 0 : index
    %c1 = arith.constant 1 : index
    %c0_24 = arith.constant 0 : index
    %c0_25 = arith.constant 0 : index
    %14 = vector.load %arg2[%c0_23, %c1, %c0_24, %c0_25] : memref<5x3x128x128xf32, #tpu.memory_space<vmem>>, vector<1x1x128x128xf32>
    %15 = vector.shape_cast %14 : vector<1x1x128x128xf32> to vector<128x128xf32>
    %cst_26 = arith.constant dense<0.000000e+00> : vector<16x128xf32>
    %16 = tpu.matmul %13, %15, %cst_26 {dimension_numbers = #tpu.dot_dimension_numbers<[1], [0], [0], [1], [0, 0, 1, 1], [], []>} : vector<16x128xf32>, vector<128x128xf32>, vector<16x128xf32> -> vector<16x128xf32>
    %17 = arith.addf %11, %16 : vector<16x128xf32>
    %c0_27 = arith.constant 0 : index
    %c17 = arith.constant 17 : index
    %c0_28 = arith.constant 0 : index
    %18 = vector.load %arg5[%c0_27, %c17, %c0_28] : memref<1x48x128xf32, #tpu.memory_space<vmem>>, vector<1x16x128xf32>
    %19 = vector.shape_cast %18 : vector<1x16x128xf32> to vector<16x128xf32>
    %c0_29 = arith.constant 0 : index
    %c2 = arith.constant 2 : index
    %c0_30 = arith.constant 0 : index
    %c0_31 = arith.constant 0 : index
    %20 = vector.load %arg2[%c0_29, %c2, %c0_30, %c0_31] : memref<5x3x128x128xf32, #tpu.memory_space<vmem>>, vector<1x1x128x128xf32>
    %21 = vector.shape_cast %20 : vector<1x1x128x128xf32> to vector<128x128xf32>
    %cst_32 = arith.constant dense<0.000000e+00> : vector<16x128xf32>
    %22 = tpu.matmul %19, %21, %cst_32 {dimension_numbers = #tpu.dot_dimension_numbers<[1], [0], [0], [1], [0, 0, 1, 1], [], []>} : vector<16x128xf32>, vector<128x128xf32>, vector<16x128xf32> -> vector<16x128xf32>
    %23 = arith.addf %17, %22 : vector<16x128xf32>
    %24 = vector.shape_cast %23 : vector<16x128xf32> to vector<1x16x128xf32>
    %c0_33 = arith.constant 0 : index
    %c0_34 = arith.constant 0 : index
    %c0_35 = arith.constant 0 : index
    %25 = vector.load %arg3[%c0_33, %c0_34, %c0_35] : memref<5x1x128xf32, #tpu.memory_space<vmem>>, vector<1x1x128xf32>
    %26 = vector.shape_cast %25 : vector<1x1x128xf32> to vector<1x128xf32>
    %27 = vector.shape_cast %26 : vector<1x128xf32> to vector<1x1x128xf32>
    %28 = vector.broadcast %27 : vector<1x1x128xf32> to vector<1x16x128xf32>
    %29 = arith.addf %24, %28 : vector<1x16x128xf32>
    %cst_36 = arith.constant 0.000000e+00 : f32
    %30 = vector.broadcast %cst_36 : f32 to vector<1x16x128xf32>
    %31 = arith.maximumf %29, %30 : vector<1x16x128xf32>
    %c0_37 = arith.constant 0 : index
    %c16_38 = arith.constant 16 : index
    %c0_39 = arith.constant 0 : index
    %32 = vector.load %arg6[%c0_37, %c16_38, %c0_39] : memref<1x48x128xf32, #tpu.memory_space<vmem>>, vector<1x16x128xf32>
    tpu.vector_store %arg6[%c0_37, %c16_38, %c0_39], %31 {strides = array<i32>} : memref<1x48x128xf32, #tpu.memory_space<vmem>>, vector<1x16x128xf32>,
    %c0_40 = arith.constant 0 : index
    %c14 = arith.constant 14 : index
    %c0_41 = arith.constant 0 : index
    %33 = vector.load %arg6[%c0_40, %c14, %c0_41] : memref<1x48x128xf32, #tpu.memory_space<vmem>>, vector<1x16x128xf32>
    %34 = vector.shape_cast %33 : vector<1x16x128xf32> to vector<16x128xf32>
    %c1_42 = arith.constant 1 : index
    %c0_43 = arith.constant 0 : index
    %c0_44 = arith.constant 0 : index
    %c0_45 = arith.constant 0 : index
    %35 = vector.load %arg2[%c1_42, %c0_43, %c0_44, %c0_45] : memref<5x3x128x128xf32, #tpu.memory_space<vmem>>, vector<1x1x128x128xf32>
    %36 = vector.shape_cast %35 : vector<1x1x128x128xf32> to vector<128x128xf32>
    %cst_46 = arith.constant dense<0.000000e+00> : vector<16x128xf32>
    %37 = tpu.matmul %34, %36, %cst_46 {dimension_numbers = #tpu.dot_dimension_numbers<[1], [0], [0], [1], [0, 0, 1, 1], [], []>} : vector<16x128xf32>, vector<128x128xf32>, vector<16x128xf32> -> vector<16x128xf32>
    %c0_47 = arith.constant 0 : index
    %c16_48 = arith.constant 16 : index
    %c0_49 = arith.constant 0 : index
    %38 = vector.load %arg6[%c0_47, %c16_48, %c0_49] : memref<1x48x128xf32, #tpu.memory_space<vmem>>, vector<1x16x128xf32>
    %39 = vector.shape_cast %38 : vector<1x16x128xf32> to vector<16x128xf32>
    %c1_50 = arith.constant 1 : index
    %c1_51 = arith.constant 1 : index
    %c0_52 = arith.constant 0 : index
    %c0_53 = arith.constant 0 : index
    %40 = vector.load %arg2[%c1_50, %c1_51, %c0_52, %c0_53] : memref<5x3x128x128xf32, #tpu.memory_space<vmem>>, vector<1x1x128x128xf32>
    %41 = vector.shape_cast %40 : vector<1x1x128x128xf32> to vector<128x128xf32>
    %cst_54 = arith.constant dense<0.000000e+00> : vector<16x128xf32>
    %42 = tpu.matmul %39, %41, %cst_54 {dimension_numbers = #tpu.dot_dimension_numbers<[1], [0], [0], [1], [0, 0, 1, 1], [], []>} : vector<16x128xf32>, vector<128x128xf32>, vector<16x128xf32> -> vector<16x128xf32>
    %43 = arith.addf %37, %42 : vector<16x128xf32>
    %c0_55 = arith.constant 0 : index
    %c18 = arith.constant 18 : index
    %c0_56 = arith.constant 0 : index
    %44 = vector.load %arg6[%c0_55, %c18, %c0_56] : memref<1x48x128xf32, #tpu.memory_space<vmem>>, vector<1x16x128xf32>
    %45 = vector.shape_cast %44 : vector<1x16x128xf32> to vector<16x128xf32>
    %c1_57 = arith.constant 1 : index
    %c2_58 = arith.constant 2 : index
    %c0_59 = arith.constant 0 : index
    %c0_60 = arith.constant 0 : index
    %46 = vector.load %arg2[%c1_57, %c2_58, %c0_59, %c0_60] : memref<5x3x128x128xf32, #tpu.memory_space<vmem>>, vector<1x1x128x128xf32>
    %47 = vector.shape_cast %46 : vector<1x1x128x128xf32> to vector<128x128xf32>
    %cst_61 = arith.constant dense<0.000000e+00> : vector<16x128xf32>
    %48 = tpu.matmul %45, %47, %cst_61 {dimension_numbers = #tpu.dot_dimension_numbers<[1], [0], [0], [1], [0, 0, 1, 1], [], []>} : vector<16x128xf32>, vector<128x128xf32>, vector<16x128xf32> -> vector<16x128xf32>
    %49 = arith.addf %43, %48 : vector<16x128xf32>
    %50 = vector.shape_cast %49 : vector<16x128xf32> to vector<1x16x128xf32>
    %c1_62 = arith.constant 1 : index
    %c0_63 = arith.constant 0 : index
    %c0_64 = arith.constant 0 : index
    %51 = vector.load %arg3[%c1_62, %c0_63, %c0_64] : memref<5x1x128xf32, #tpu.memory_space<vmem>>, vector<1x1x128xf32>
    %52 = vector.shape_cast %51 : vector<1x1x128xf32> to vector<1x128xf32>
    %53 = vector.shape_cast %52 : vector<1x128xf32> to vector<1x1x128xf32>
    %54 = vector.broadcast %53 : vector<1x1x128xf32> to vector<1x16x128xf32>
    %55 = arith.addf %50, %54 : vector<1x16x128xf32>
    %cst_65 = arith.constant 0.000000e+00 : f32
    %56 = vector.broadcast %cst_65 : f32 to vector<1x16x128xf32>
    %57 = arith.maximumf %55, %56 : vector<1x16x128xf32>
    %c0_66 = arith.constant 0 : index
    %c16_67 = arith.constant 16 : index
    %c0_68 = arith.constant 0 : index
    %58 = vector.load %arg5[%c0_66, %c16_67, %c0_68] : memref<1x48x128xf32, #tpu.memory_space<vmem>>, vector<1x16x128xf32>
    tpu.vector_store %arg5[%c0_66, %c16_67, %c0_68], %57 {strides = array<i32>} : memref<1x48x128xf32, #tpu.memory_space<vmem>>, vector<1x16x128xf32>,
    %c0_69 = arith.constant 0 : index
    %c12 = arith.constant 12 : index
    %c0_70 = arith.constant 0 : index
    %59 = vector.load %arg5[%c0_69, %c12, %c0_70] : memref<1x48x128xf32, #tpu.memory_space<vmem>>, vector<1x16x128xf32>
    %60 = vector.shape_cast %59 : vector<1x16x128xf32> to vector<16x128xf32>
    %c2_71 = arith.constant 2 : index
    %c0_72 = arith.constant 0 : index
    %c0_73 = arith.constant 0 : index
    %c0_74 = arith.constant 0 : index
    %61 = vector.load %arg2[%c2_71, %c0_72, %c0_73, %c0_74] : memref<5x3x128x128xf32, #tpu.memory_space<vmem>>, vector<1x1x128x128xf32>
    %62 = vector.shape_cast %61 : vector<1x1x128x128xf32> to vector<128x128xf32>
    %cst_75 = arith.constant dense<0.000000e+00> : vector<16x128xf32>
    %63 = tpu.matmul %60, %62, %cst_75 {dimension_numbers = #tpu.dot_dimension_numbers<[1], [0], [0], [1], [0, 0, 1, 1], [], []>} : vector<16x128xf32>, vector<128x128xf32>, vector<16x128xf32> -> vector<16x128xf32>
    %c0_76 = arith.constant 0 : index
    %c16_77 = arith.constant 16 : index
    %c0_78 = arith.constant 0 : index
    %64 = vector.load %arg5[%c0_76, %c16_77, %c0_78] : memref<1x48x128xf32, #tpu.memory_space<vmem>>, vector<1x16x128xf32>
    %65 = vector.shape_cast %64 : vector<1x16x128xf32> to vector<16x128xf32>
    %c2_79 = arith.constant 2 : index
    %c1_80 = arith.constant 1 : index
    %c0_81 = arith.constant 0 : index
    %c0_82 = arith.constant 0 : index
    %66 = vector.load %arg2[%c2_79, %c1_80, %c0_81, %c0_82] : memref<5x3x128x128xf32, #tpu.memory_space<vmem>>, vector<1x1x128x128xf32>
    %67 = vector.shape_cast %66 : vector<1x1x128x128xf32> to vector<128x128xf32>
    %cst_83 = arith.constant dense<0.000000e+00> : vector<16x128xf32>
    %68 = tpu.matmul %65, %67, %cst_83 {dimension_numbers = #tpu.dot_dimension_numbers<[1], [0], [0], [1], [0, 0, 1, 1], [], []>} : vector<16x128xf32>, vector<128x128xf32>, vector<16x128xf32> -> vector<16x128xf32>
    %69 = arith.addf %63, %68 : vector<16x128xf32>
    %c0_84 = arith.constant 0 : index
    %c20 = arith.constant 20 : index
    %c0_85 = arith.constant 0 : index
    %70 = vector.load %arg5[%c0_84, %c20, %c0_85] : memref<1x48x128xf32, #tpu.memory_space<vmem>>, vector<1x16x128xf32>
    %71 = vector.shape_cast %70 : vector<1x16x128xf32> to vector<16x128xf32>
    %c2_86 = arith.constant 2 : index
    %c2_87 = arith.constant 2 : index
    %c0_88 = arith.constant 0 : index
    %c0_89 = arith.constant 0 : index
    %72 = vector.load %arg2[%c2_86, %c2_87, %c0_88, %c0_89] : memref<5x3x128x128xf32, #tpu.memory_space<vmem>>, vector<1x1x128x128xf32>
    %73 = vector.shape_cast %72 : vector<1x1x128x128xf32> to vector<128x128xf32>
    %cst_90 = arith.constant dense<0.000000e+00> : vector<16x128xf32>
    %74 = tpu.matmul %71, %73, %cst_90 {dimension_numbers = #tpu.dot_dimension_numbers<[1], [0], [0], [1], [0, 0, 1, 1], [], []>} : vector<16x128xf32>, vector<128x128xf32>, vector<16x128xf32> -> vector<16x128xf32>
    %75 = arith.addf %69, %74 : vector<16x128xf32>
    %76 = vector.shape_cast %75 : vector<16x128xf32> to vector<1x16x128xf32>
    %c2_91 = arith.constant 2 : index
    %c0_92 = arith.constant 0 : index
    %c0_93 = arith.constant 0 : index
    %77 = vector.load %arg3[%c2_91, %c0_92, %c0_93] : memref<5x1x128xf32, #tpu.memory_space<vmem>>, vector<1x1x128xf32>
    %78 = vector.shape_cast %77 : vector<1x1x128xf32> to vector<1x128xf32>
    %79 = vector.shape_cast %78 : vector<1x128xf32> to vector<1x1x128xf32>
    %80 = vector.broadcast %79 : vector<1x1x128xf32> to vector<1x16x128xf32>
    %81 = arith.addf %76, %80 : vector<1x16x128xf32>
    %cst_94 = arith.constant 0.000000e+00 : f32
    %82 = vector.broadcast %cst_94 : f32 to vector<1x16x128xf32>
    %83 = arith.maximumf %81, %82 : vector<1x16x128xf32>
    %c0_95 = arith.constant 0 : index
    %c16_96 = arith.constant 16 : index
    %c0_97 = arith.constant 0 : index
    %84 = vector.load %arg6[%c0_95, %c16_96, %c0_97] : memref<1x48x128xf32, #tpu.memory_space<vmem>>, vector<1x16x128xf32>
    tpu.vector_store %arg6[%c0_95, %c16_96, %c0_97], %83 {strides = array<i32>} : memref<1x48x128xf32, #tpu.memory_space<vmem>>, vector<1x16x128xf32>,
    %c0_98 = arith.constant 0 : index
    %c8 = arith.constant 8 : index
    %c0_99 = arith.constant 0 : index
    %85 = vector.load %arg6[%c0_98, %c8, %c0_99] : memref<1x48x128xf32, #tpu.memory_space<vmem>>, vector<1x16x128xf32>
    %86 = vector.shape_cast %85 : vector<1x16x128xf32> to vector<16x128xf32>
    %c3 = arith.constant 3 : index
    %c0_100 = arith.constant 0 : index
    %c0_101 = arith.constant 0 : index
    %c0_102 = arith.constant 0 : index
    %87 = vector.load %arg2[%c3, %c0_100, %c0_101, %c0_102] : memref<5x3x128x128xf32, #tpu.memory_space<vmem>>, vector<1x1x128x128xf32>
    %88 = vector.shape_cast %87 : vector<1x1x128x128xf32> to vector<128x128xf32>
    %cst_103 = arith.constant dense<0.000000e+00> : vector<16x128xf32>
    %89 = tpu.matmul %86, %88, %cst_103 {dimension_numbers = #tpu.dot_dimension_numbers<[1], [0], [0], [1], [0, 0, 1, 1], [], []>} : vector<16x128xf32>, vector<128x128xf32>, vector<16x128xf32> -> vector<16x128xf32>
    %c0_104 = arith.constant 0 : index
    %c16_105 = arith.constant 16 : index
    %c0_106 = arith.constant 0 : index
    %90 = vector.load %arg6[%c0_104, %c16_105, %c0_106] : memref<1x48x128xf32, #tpu.memory_space<vmem>>, vector<1x16x128xf32>
    %91 = vector.shape_cast %90 : vector<1x16x128xf32> to vector<16x128xf32>
    %c3_107 = arith.constant 3 : index
    %c1_108 = arith.constant 1 : index
    %c0_109 = arith.constant 0 : index
    %c0_110 = arith.constant 0 : index
    %92 = vector.load %arg2[%c3_107, %c1_108, %c0_109, %c0_110] : memref<5x3x128x128xf32, #tpu.memory_space<vmem>>, vector<1x1x128x128xf32>
    %93 = vector.shape_cast %92 : vector<1x1x128x128xf32> to vector<128x128xf32>
    %cst_111 = arith.constant dense<0.000000e+00> : vector<16x128xf32>
    %94 = tpu.matmul %91, %93, %cst_111 {dimension_numbers = #tpu.dot_dimension_numbers<[1], [0], [0], [1], [0, 0, 1, 1], [], []>} : vector<16x128xf32>, vector<128x128xf32>, vector<16x128xf32> -> vector<16x128xf32>
    %95 = arith.addf %89, %94 : vector<16x128xf32>
    %c0_112 = arith.constant 0 : index
    %c24 = arith.constant 24 : index
    %c0_113 = arith.constant 0 : index
    %96 = vector.load %arg6[%c0_112, %c24, %c0_113] : memref<1x48x128xf32, #tpu.memory_space<vmem>>, vector<1x16x128xf32>
    %97 = vector.shape_cast %96 : vector<1x16x128xf32> to vector<16x128xf32>
    %c3_114 = arith.constant 3 : index
    %c2_115 = arith.constant 2 : index
    %c0_116 = arith.constant 0 : index
    %c0_117 = arith.constant 0 : index
    %98 = vector.load %arg2[%c3_114, %c2_115, %c0_116, %c0_117] : memref<5x3x128x128xf32, #tpu.memory_space<vmem>>, vector<1x1x128x128xf32>
    %99 = vector.shape_cast %98 : vector<1x1x128x128xf32> to vector<128x128xf32>
    %cst_118 = arith.constant dense<0.000000e+00> : vector<16x128xf32>
    %100 = tpu.matmul %97, %99, %cst_118 {dimension_numbers = #tpu.dot_dimension_numbers<[1], [0], [0], [1], [0, 0, 1, 1], [], []>} : vector<16x128xf32>, vector<128x128xf32>, vector<16x128xf32> -> vector<16x128xf32>
    %101 = arith.addf %95, %100 : vector<16x128xf32>
    %102 = vector.shape_cast %101 : vector<16x128xf32> to vector<1x16x128xf32>
    %c3_119 = arith.constant 3 : index
    %c0_120 = arith.constant 0 : index
    %c0_121 = arith.constant 0 : index
    %103 = vector.load %arg3[%c3_119, %c0_120, %c0_121] : memref<5x1x128xf32, #tpu.memory_space<vmem>>, vector<1x1x128xf32>
    %104 = vector.shape_cast %103 : vector<1x1x128xf32> to vector<1x128xf32>
    %105 = vector.shape_cast %104 : vector<1x128xf32> to vector<1x1x128xf32>
    %106 = vector.broadcast %105 : vector<1x1x128xf32> to vector<1x16x128xf32>
    %107 = arith.addf %102, %106 : vector<1x16x128xf32>
    %cst_122 = arith.constant 0.000000e+00 : f32
    %108 = vector.broadcast %cst_122 : f32 to vector<1x16x128xf32>
    %109 = arith.maximumf %107, %108 : vector<1x16x128xf32>
    %c0_123 = arith.constant 0 : index
    %c16_124 = arith.constant 16 : index
    %c0_125 = arith.constant 0 : index
    %110 = vector.load %arg5[%c0_123, %c16_124, %c0_125] : memref<1x48x128xf32, #tpu.memory_space<vmem>>, vector<1x16x128xf32>
    tpu.vector_store %arg5[%c0_123, %c16_124, %c0_125], %109 {strides = array<i32>} : memref<1x48x128xf32, #tpu.memory_space<vmem>>, vector<1x16x128xf32>,
    %c0_126 = arith.constant 0 : index
    %c0_127 = arith.constant 0 : index
    %c0_128 = arith.constant 0 : index
    %111 = vector.load %arg5[%c0_126, %c0_127, %c0_128] : memref<1x48x128xf32, #tpu.memory_space<vmem>>, vector<1x16x128xf32>
    %112 = vector.shape_cast %111 : vector<1x16x128xf32> to vector<16x128xf32>
    %c4 = arith.constant 4 : index
    %c0_129 = arith.constant 0 : index
    %c0_130 = arith.constant 0 : index
    %c0_131 = arith.constant 0 : index
    %113 = vector.load %arg2[%c4, %c0_129, %c0_130, %c0_131] : memref<5x3x128x128xf32, #tpu.memory_space<vmem>>, vector<1x1x128x128xf32>
    %114 = vector.shape_cast %113 : vector<1x1x128x128xf32> to vector<128x128xf32>
    %cst_132 = arith.constant dense<0.000000e+00> : vector<16x128xf32>
    %115 = tpu.matmul %112, %114, %cst_132 {dimension_numbers = #tpu.dot_dimension_numbers<[1], [0], [0], [1], [0, 0, 1, 1], [], []>} : vector<16x128xf32>, vector<128x128xf32>, vector<16x128xf32> -> vector<16x128xf32>
    %c0_133 = arith.constant 0 : index
    %c16_134 = arith.constant 16 : index
    %c0_135 = arith.constant 0 : index
    %116 = vector.load %arg5[%c0_133, %c16_134, %c0_135] : memref<1x48x128xf32, #tpu.memory_space<vmem>>, vector<1x16x128xf32>
    %117 = vector.shape_cast %116 : vector<1x16x128xf32> to vector<16x128xf32>
    %c4_136 = arith.constant 4 : index
    %c1_137 = arith.constant 1 : index
    %c0_138 = arith.constant 0 : index
    %c0_139 = arith.constant 0 : index
    %118 = vector.load %arg2[%c4_136, %c1_137, %c0_138, %c0_139] : memref<5x3x128x128xf32, #tpu.memory_space<vmem>>, vector<1x1x128x128xf32>
    %119 = vector.shape_cast %118 : vector<1x1x128x128xf32> to vector<128x128xf32>
    %cst_140 = arith.constant dense<0.000000e+00> : vector<16x128xf32>
    %120 = tpu.matmul %117, %119, %cst_140 {dimension_numbers = #tpu.dot_dimension_numbers<[1], [0], [0], [1], [0, 0, 1, 1], [], []>} : vector<16x128xf32>, vector<128x128xf32>, vector<16x128xf32> -> vector<16x128xf32>
    %121 = arith.addf %115, %120 : vector<16x128xf32>
    %c0_141 = arith.constant 0 : index
    %c32_142 = arith.constant 32 : index
    %c0_143 = arith.constant 0 : index
    %122 = vector.load %arg5[%c0_141, %c32_142, %c0_143] : memref<1x48x128xf32, #tpu.memory_space<vmem>>, vector<1x16x128xf32>
    %123 = vector.shape_cast %122 : vector<1x16x128xf32> to vector<16x128xf32>
    %c4_144 = arith.constant 4 : index
    %c2_145 = arith.constant 2 : index
    %c0_146 = arith.constant 0 : index
    %c0_147 = arith.constant 0 : index
    %124 = vector.load %arg2[%c4_144, %c2_145, %c0_146, %c0_147] : memref<5x3x128x128xf32, #tpu.memory_space<vmem>>, vector<1x1x128x128xf32>
    %125 = vector.shape_cast %124 : vector<1x1x128x128xf32> to vector<128x128xf32>
    %cst_148 = arith.constant dense<0.000000e+00> : vector<16x128xf32>
    %126 = tpu.matmul %123, %125, %cst_148 {dimension_numbers = #tpu.dot_dimension_numbers<[1], [0], [0], [1], [0, 0, 1, 1], [], []>} : vector<16x128xf32>, vector<128x128xf32>, vector<16x128xf32> -> vector<16x128xf32>
    %127 = arith.addf %121, %126 : vector<16x128xf32>
    %128 = vector.shape_cast %127 : vector<16x128xf32> to vector<1x16x128xf32>
    %c4_149 = arith.constant 4 : index
    %c0_150 = arith.constant 0 : index
    %c0_151 = arith.constant 0 : index
    %129 = vector.load %arg3[%c4_149, %c0_150, %c0_151] : memref<5x1x128xf32, #tpu.memory_space<vmem>>, vector<1x1x128xf32>
    %130 = vector.shape_cast %129 : vector<1x1x128xf32> to vector<1x128xf32>
    %131 = vector.shape_cast %130 : vector<1x128xf32> to vector<1x1x128xf32>
    %132 = vector.broadcast %131 : vector<1x1x128xf32> to vector<1x16x128xf32>
    %133 = arith.addf %128, %132 : vector<1x16x128xf32>
    %134 = vector.extract_strided_slice %133 {offsets = [0, 0, 0], sizes = [1, 16, 3], strides = [1, 1, 1]} : vector<1x16x128xf32> to vector<1x16x3xf32>
    %c0_152 = arith.constant 0 : index
    %c0_153 = arith.constant 0 : index
    %c0_154 = arith.constant 0 : index
    %135 = vector.load %arg4[%c0_152, %c0_153, %c0_154] : memref<1x16x3xf32, #tpu.memory_space<vmem>>, vector<1x16x3xf32>
    tpu.vector_store %arg4[%c0_152, %c0_153, %c0_154], %134 {strides = array<i32>} : memref<1x16x3xf32, #tpu.memory_space<vmem>>, vector<1x16x3xf32>,
    return
  }
  func.func @transform_0(%arg0: i32) -> (i32, i32, i32) {
    %c0_i32 = arith.constant 0 : i32
    %c0_i32_0 = arith.constant 0 : i32
    %c0_i32_1 = arith.constant 0 : i32
    return %arg0, %c0_i32, %c0_i32_0 : i32, i32, i32
  }
  func.func @transform_1(%arg0: i32) -> (i32, i32, i32, i32) {
    %c0_i32 = arith.constant 0 : i32
    %c0_i32_0 = arith.constant 0 : i32
    %c0_i32_1 = arith.constant 0 : i32
    %c0_i32_2 = arith.constant 0 : i32
    %c0_i32_3 = arith.constant 0 : i32
    return %c0_i32, %c0_i32_0, %c0_i32_1, %c0_i32_2 : i32, i32, i32, i32
  }
  func.func @transform_2(%arg0: i32) -> (i32, i32, i32) {
    %c0_i32 = arith.constant 0 : i32
    %c0_i32_0 = arith.constant 0 : i32
    %c0_i32_1 = arith.constant 0 : i32
    %c0_i32_2 = arith.constant 0 : i32
    return %c0_i32, %c0_i32_0, %c0_i32_1 : i32, i32, i32
  }
  func.func @transform_3(%arg0: i32) -> (i32, i32, i32) {
    %c0_i32 = arith.constant 0 : i32
    %c0_i32_0 = arith.constant 0 : i32
    %c0_i32_1 = arith.constant 0 : i32
    return %arg0, %c0_i32, %c0_i32_0 : i32, i32, i32
  }
}

</mosaic_0001>

<bundles_post_ra>
// kernel: noise_predictor_tcn_forward.1
= control target key start
LH: loop header
LB: loop body
LE: loop exit
PB: predicated region body
PF: predicated region fallthrough
CT: control target
= control target key end

     0   :  { %8 = vsyncpa [#allocation5], 0  ;;  %s1089_s12 = smov 0   ;;  %s1151_s0 = inlined_call_operand.vmem [shape: f32[2,16,3], index: 0, kind: input, shape index: {}]   ;;  %s1152_s1 = inlined_call_operand.hbm [shape: f32[5,3,128,128], index: 1, kind: input, shape index: {}]   ;;  %s1153_s2 = inlined_call_operand.vmem [shape: f32[5,1,128], index: 2, kind: input, shape index: {}]   ;;  %s1154_s3 = inlined_call_operand.vmem [shape: f32[2,16,3], index: 3, kind: output, shape index: {}]  }
   0x1 LB: > { %s124_s15 = sshll.u32 %s1152_s1, 4  ;;  %s1098_s16 = sadd.s32 4294967295, %s1063_s12   ;;  %s1063_s12 = sphi %s1089_s12, %s14_s12   ;;  %s125_s15 = int_to_ptr.hbm [resolvable:$true] %s124_s15 }
   0x2   : > { %p962_p0 = scmp.ge.s32.totalorder %s1063_s12, 1  ;;  %p113_p1 = scmp.lt.s32.totalorder %s1063_s12, 3 }
   0x3   : > { %p1003_p2 = scmp.eq.s32.totalorder %s1098_s16, 0  ;;  %s1065_s17 = smov [#allocation4]  }
   0x4   : > { %p114_p3 = pnand %p962_p0, %p113_p1  ;;  %s126_s18 = sshll.u32 %s1065_s17, 4  ;;  %s127_s18 = int_to_ptr.vmem [resolvable:$true] %s126_s18 }
   0x5   : > { %s1066_s19 = smov 128   ;;  %s1067_s20 = smov 8  }
   0x6   : > { %p999_p4 = pneg %p114_p3  ;;  %153 = sbr.rel (%p114_p3) target bundleno = 772 (0x304), region = 32 }
   0x8   : > { %p1000_p5 = pnand %p1003_p2, %p999_p4 }
   0xa   : > { %1002 = dma.hbm_to_vmem [thread:$0]  (!%p1000_p5), %s125_s15, 30720, %s127_s18, [#allocation5], %s1066_s19, %s1066_s19, %s1067_s20  }
   0xb   : > { %1058 = dma.done.wait (%p1003_p2), [#allocation5], 30720  }
   0xc   : > { %1060 = vsyncadd (%p1003_p2), [#allocation5], 4294936576  ;;  %v1068_v0 = vmov 0.0   ;;  %v304_v1 = vld [vmem:[#allocation4 + $0x178] sm:$0xff]  ;;  %v303_v2 = vld [vmem:[#allocation4 + $0x170] sm:$0xff]  ;;  %p178_p6 = scmp.lt.s32.totalorder %s1098_s16, 1 }
   0xd   : > { %190 = vst [vmem:[#allocation2 + $0x10] sm:$0xff] %v1068_v0  ;;  %v239_v3 = vld [vmem:[#allocation4 + $0xf8] sm:$0xff]  ;;  %305 = vmatpush.msra.mxu2 %v304_v1  ;;  %v238_v5 = vld [vmem:[#allocation4 + $0xf0] sm:$0xff]  ;;  %v302_v6 = vld [vmem:[#allocation4 + $0x168] sm:$0xff]  ;;  %vm200_vm0 = vcmask 23552  }
   0xe   : > { %191 = vst [vmem:[#allocation2 + $0x18] sm:$0xff] %v1068_v0  ;;  %240 = vmatpush.msra.mxu0 %v239_v3  ;;  %v220_v4 = vld [vmem:[#allocation4 + $0x78] sm:$0xff]  ;;  %v219_v7 = vld [vmem:[#allocation4 + $0x70] sm:$0xff]  ;;  %v237_v8 = vld [vmem:[#allocation4 + $0xe8] sm:$0xff]  ;;  %s1156_s16 = smov (!%p178_p6, %s1098_s16), 1 }
   0xf   : > { %194 = vst [vmem:[#allocation3] sm:$0xff] %v1068_v0  ;;  %263 = vmatpush.msra.mxu1 %v220_v4  ;;  %306 = vmatpush.msra.mxu2 %v303_v2  ;;  %v218_v9 = vld [vmem:[#allocation4 + $0x68] sm:$0xff]  ;;  %v301_v10 = vld [vmem:[#allocation4 + $0x160] sm:$0xff]  ;;  %v300_v13 = vld [vmem:[#allocation4 + $0x158] sm:$0xff]  ;;  %s977_s21 = sshll.u32 %s1156_s16, 4 }
  0x10   : > { %189 = vst [vmem:[#allocation2 + $0x8] sm:$0xff] %v1068_v0  ;;  %241 = vmatpush.msra.mxu0 %v238_v5  ;;  %v236_v11 = vld [vmem:[#allocation4 + $0xe0] sm:$0xff]  ;;  %v235_v14 = vld [vmem:[#allocation4 + $0xd8] sm:$0xff]  ;;  %v299_v16 = vld [vmem:[#allocation4 + $0x150] sm:$0xff]  ;;  %s182_s24 = scalar_lea.vmem %s1151_s0, %s977_s21  ;;  %s187_s10 = scalar_lea.vmem %s1154_s3, %s977_s21 }
  0x11   : > { %192 = vst [vmem:[#allocation2 + $0x20] sm:$0xff] %v1068_v0  ;;  %264 = vmatpush.msra.mxu1 %v219_v7  ;;  %307 = vmatpush.msra.mxu2 %v302_v6  ;;  %v217_v12 = vld [vmem:[#allocation4 + $0x60] sm:$0xff]  ;;  %v216_v15 = vld [vmem:[#allocation4 + $0x58] sm:$0xff]  ;;  %v234_v17 = vld [vmem:[#allocation4 + $0xd0] sm:$0xff] }
  0x12   : > { %195 = vst [vmem:[#allocation3 + $0x8] sm:$0xff] %v1068_v0  ;;  %242 = vmatpush.msra.mxu0 %v237_v8  ;;  %v215_v18 = vld [vmem:[#allocation4 + $0x50] sm:$0xff]  ;;  %v298_v19 = vld [vmem:[#allocation4 + $0x148] sm:$0xff]  ;;  %v297_v22 = vld [vmem:[#allocation4 + $0x140] sm:$0xff] }
  0x13   : > { %196 = vst [vmem:[#allocation3 + $0x20] sm:$0xff] %v1068_v0  ;;  %265 = vmatpush.msra.mxu1 %v218_v9  ;;  %308 = vmatpush.msra.mxu2 %v301_v10  ;;  %v233_v20 = vld [vmem:[#allocation4 + $0xc8] sm:$0xff]  ;;  %v232_v23 = vld [vmem:[#allocation4 + $0xc0] sm:$0xff]  ;;  %v296_v25 = vld [vmem:[#allocation4 + $0x138] sm:$0xff] }
  0x14   : > { %243 = vmatpush.msra.mxu0 %v236_v11  ;;  %v214_v21 = vld [vmem:[#allocation4 + $0x48] sm:$0xff]  ;;  %v213_v24 = vld [vmem:[#allocation4 + $0x40] sm:$0xff]  ;;  %v231_v26 = vld [vmem:[#allocation4 + $0xb8] sm:$0xff] }
  0x15   : > { %266 = vmatpush.msra.mxu1 %v217_v12  ;;  %309 = vmatpush.msra.mxu2 %v300_v13  ;;  %v198_v27 = vld [vmem:[%s182_s24] sm:$0xff]  ;;  %v212_v28 = vld [vmem:[#allocation4 + $0x38] sm:$0xff]  ;;  %v199_v29 = vld [vmem:[%s182_s24 + $0x8] sm:$0xff] }
  0x16   : > { %244 = vmatpush.msra.mxu0 %v235_v14  ;;  %201 = vst.msk [vmem:[#allocation2 + $0x10] sm:$0xff] %vm200_vm0, %v198_v27  ;;  %v295_v30 = vld [vmem:[#allocation4 + $0x130] sm:$0xff]  ;;  %v377_v32 = vld [vmem:[#allocation4 + $0x278] sm:$0xff]  ;;  %v294_v35 = vld [vmem:[#allocation4 + $0x128] sm:$0xff] }
  0x17   : > { %267 = vmatpush.msra.mxu1 %v216_v15  ;;  %310 = vmatpush.msra.mxu2 %v299_v16  ;;  %v230_v31 = vld [vmem:[#allocation4 + $0xb0] sm:$0xff]  ;;  %202 = vst.msk [vmem:[#allocation2 + $0x18] sm:$0xff] %vm200_vm0, %v199_v29  ;;  %v229_v36 = vld [vmem:[#allocation4 + $0xa8] sm:$0xff]  ;;  %v293_v39 = vld [vmem:[#allocation4 + $0x120] sm:$0xff] }
  0x18   : > { %245 = vmatpush.msra.mxu0 %v234_v17  ;;  %v211_v33 = vld [vmem:[#allocation4 + $0x30] sm:$0xff]  ;;  %378 = vmatpush.msra.mxu3 %v377_v32  ;;  %v210_v37 = vld [vmem:[#allocation4 + $0x28] sm:$0xff]  ;;  %v228_v40 = vld [vmem:[#allocation4 + $0xa0] sm:$0xff] }
  0x19   : > { %268 = vmatpush.msra.mxu1 %v215_v18  ;;  %311 = vmatpush.msra.mxu2 %v298_v19  ;;  %v376_v34 = vld [vmem:[#allocation4 + $0x270] sm:$0xff]  ;;  %v375_v38 = vld [vmem:[#allocation4 + $0x268] sm:$0xff]  ;;  %v292_v41 = vld [vmem:[#allocation4 + $0x118] sm:$0xff] }
  0x1a   : > { %246 = vmatpush.msra.mxu0 %v233_v20  ;;  %379 = vmatpush.msra.mxu3 %v376_v34  ;;  %v209_v42 = vld [vmem:[#allocation4 + $0x20] sm:$0xff]  ;;  %v291_v44 = vld [vmem:[#allocation4 + $0x110] sm:$0xff]  ;;  %v227_v45 = vld [vmem:[#allocation4 + $0x98] sm:$0xff] }
  0x1b   : > { %269 = vmatpush.msra.mxu1 %v214_v21  ;;  %312 = vmatpush.msra.mxu2 %v297_v22  ;;  %v374_v43 = vld [vmem:[#allocation4 + $0x260] sm:$0xff]  ;;  %v208_v46 = vld [vmem:[#allocation4 + $0x18] sm:$0xff]  ;;  %v226_v47 = vld [vmem:[#allocation4 + $0x90] sm:$0xff] }
  0x1c   : > { %247 = vmatpush.msra.mxu0 %v232_v23  ;;  %380 = vmatpush.msra.mxu3 %v375_v38  ;;  %v207_v48 = vld [vmem:[#allocation4 + $0x10] sm:$0xff]  ;;  %v373_v49 = vld [vmem:[#allocation4 + $0x258] sm:$0xff]  ;;  %v290_v51 = vld [vmem:[#allocation4 + $0x108] sm:$0xff] }
  0x1d   : > { %270 = vmatpush.msra.mxu1 %v213_v24  ;;  %313 = vmatpush.msra.mxu2 %v296_v25  ;;  %v372_v50 = vld [vmem:[#allocation4 + $0x250] sm:$0xff]  ;;  %v225_v52 = vld [vmem:[#allocation4 + $0x88] sm:$0xff]  ;;  %v289_v55 = vld [vmem:[#allocation4 + $0x100] sm:$0xff] }
  0x1e   : > { %248 = vmatpush.msra.mxu0 %v231_v26  ;;  %381 = vmatpush.msra.mxu3 %v374_v43  ;;  %v206_v53 = vld [vmem:[#allocation4 + $0x8] sm:$0xff]  ;;  %v224_v56 = vld [vmem:[#allocation4 + $0x80] sm:$0xff]  ;;  %v286_v57 = vld [vmem:[#allocation2 + $0x11] sm:$0xff] }
  0x1f   : > { %271 = vmatpush.msra.mxu1 %v212_v28  ;;  %314 = vmatpush.msra.mxu2 %v295_v30  ;;  %v371_v54 = vld [vmem:[#allocation4 + $0x248] sm:$0xff]  ;;  %v205_v58 = vld [vmem:[#allocation4] sm:$0xff]  ;;  %v221_v59 = vld [vmem:[#allocation2 + $0x10] sm:$0xff] }
  0x20   : > { %249 = vmatpush.msra.mxu0 %v230_v31  ;;  %382 = vmatpush.msra.mxu3 %v373_v49  ;;  %v203_v60 = vld [vmem:[#allocation2 + $0xf] sm:$0xff]  ;;  %v358_v61 = vld [vmem:[#allocation4 + $0x1f8] sm:$0xff]  ;;  %v355_v5 = vld [vmem:[#allocation4 + $0x1e0] sm:$0xff] }
  0x21   : > { %272 = vmatpush.msra.mxu1 %v211_v33  ;;  %315 = vmatpush.msra.mxu2 %v294_v35  ;;  %v442_v62 = vld [vmem:[#allocation4 + $0x2f8] sm:$0xff]  ;;  %v357_v63 = vld [vmem:[#allocation4 + $0x1f0] sm:$0xff]  ;;  %v356_v2 = vld [vmem:[#allocation4 + $0x1e8] sm:$0xff] }
  0x22   : > { %250 = vmatpush.msra.mxu0 %v229_v36  ;;  %383 = vmatpush.msra.mxu3 %v372_v50  ;;  %v441_v1 = vld [vmem:[#allocation4 + $0x2f0] sm:$0xff]  ;;  %v440_v3 = vld [vmem:[#allocation4 + $0x2e8] sm:$0xff]  ;;  %v287_v4 = vld [vmem:[#allocation2 + $0x19] sm:$0xff] }
  0x23   : > { %273 = vmatpush.msra.mxu1 %v210_v37  ;;  %316 = vmatpush.msra.mxu2 %v293_v39  ;;  %v222_v6 = vld [vmem:[#allocation2 + $0x18] sm:$0xff]  ;;  %v353_v9 = vld [vmem:[#allocation4 + $0x1d0] sm:$0xff]  ;;  %v352_v10 = vld [vmem:[#allocation4 + $0x1c8] sm:$0xff] }
  0x24   : > { %251 = vmatpush.msra.mxu0 %v228_v40  ;;  %384 = vmatpush.msra.mxu3 %v371_v54  ;;  %v204_v7 = vld [vmem:[#allocation2 + $0x17] sm:$0xff]  ;;  %v370_v11 = vld [vmem:[#allocation4 + $0x240] sm:$0xff]  ;;  %v367_v14 = vld [vmem:[#allocation4 + $0x228] sm:$0xff] }
  0x25   : > { %274 = vmatpush.msra.mxu1 %v209_v42  ;;  %317 = vmatpush.msra.mxu2 %v292_v41  ;;  %v354_v8 = vld [vmem:[#allocation4 + $0x1d8] sm:$0xff]  ;;  %v368_v13 = vld [vmem:[#allocation4 + $0x230] sm:$0xff]  ;;  %v351_v15 = vld [vmem:[#allocation4 + $0x1c0] sm:$0xff] }
  0x26   : > { %252 = vmatpush.msra.mxu0 %v227_v45  ;;  %385 = vmatpush.msra.mxu3 %v370_v11  ;;  %v369_v12 = vld [vmem:[#allocation4 + $0x238] sm:$0xff]  ;;  %v439_v16 = vld [vmem:[#allocation4 + $0x2e0] sm:$0xff]  ;;  %v349_v21 = vld [vmem:[#allocation4 + $0x1b0] sm:$0xff] }
  0x27   : > { %275 = vmatpush.msra.mxu1 %v208_v46  ;;  %318 = vmatpush.msra.mxu2 %v291_v44  ;;  %v366_v17 = vld [vmem:[#allocation4 + $0x220] sm:$0xff]  ;;  %v350_v18 = vld [vmem:[#allocation4 + $0x1b8] sm:$0xff]  ;;  %v437_v22 = vld [vmem:[#allocation4 + $0x2d0] sm:$0xff] }
  0x28   : > { %253 = vmatpush.msra.mxu0 %v226_v47  ;;  %386 = vmatpush.msra.mxu3 %v369_v12  ;;  %v438_v19 = vld [vmem:[#allocation4 + $0x2d8] sm:$0xff]  ;;  %v364_v23 = vld [vmem:[#allocation4 + $0x210] sm:$0xff]  ;;  %v348_v24 = vld [vmem:[#allocation4 + $0x1a8] sm:$0xff] }
  0x29   : > { %276 = vmatpush.msra.mxu1 %v207_v48  ;;  %319 = vmatpush.msra.mxu2 %v290_v51  ;;  %v365_v20 = vld [vmem:[#allocation4 + $0x218] sm:$0xff]  ;;  %v436_v25 = vld [vmem:[#allocation4 + $0x2c8] sm:$0xff]  ;;  %v347_v27 = vld [vmem:[#allocation4 + $0x1a0] sm:$0xff] }
  0x2a   : > { %254 = vmatpush.msra.mxu0 %v225_v52  ;;  %387 = vmatpush.msra.mxu3 %v368_v13  ;;  %v363_v26 = vld [vmem:[#allocation4 + $0x208] sm:$0xff]  ;;  %v435_v28 = vld [vmem:[#allocation4 + $0x2c0] sm:$0xff]  ;;  %v346_v30 = vld [vmem:[#allocation4 + $0x198] sm:$0xff] }
  0x2b   : > { %277 = vmatpush.msra.mxu1 %v206_v53  ;;  %320 = vmatpush.msra.mxu2 %v289_v55  ;;  %v362_v29 = vld [vmem:[#allocation4 + $0x200] sm:$0xff]  ;;  %v434_v31 = vld [vmem:[#allocation4 + $0x2b8] sm:$0xff]  ;;  %v345_v32 = vld [vmem:[#allocation4 + $0x190] sm:$0xff] }
  0x2c   : > { %255 = vmatpush.msra.mxu0 %v224_v56  ;;  %321 = vmatmul.f32.vlgmr.msra.gmra.mxu2 %v286_v57  ;;  %v433_v33 = vld [vmem:[#allocation4 + $0x2b0] sm:$0xff]  ;;  %v344_v34 = vld [vmem:[#allocation4 + $0x188] sm:$0xff]  ;;  %v343_v36 = vld [vmem:[#allocation4 + $0x180] sm:$0xff] }
  0x2d   : > { %278 = vmatpush.msra.mxu1 %v205_v58  ;;  %256 = vmatmul.f32.vlgmr.msra.gmra.mxu0 %v221_v59  ;;  %v432_v35 = vld [vmem:[#allocation4 + $0x2a8] sm:$0xff]  ;;  %v431_v37 = vld [vmem:[#allocation4 + $0x2a0] sm:$0xff]  ;;  %v430_v38 = vld [vmem:[#allocation4 + $0x298] sm:$0xff] }
  0x2e   : > { %279 = vmatmul.f32.vlgmr.msra.gmra.mxu1 %v203_v60  ;;  %401 = vmatpush.msrb.mxu0 %v358_v61  ;;  %v429_v39 = vld [vmem:[#allocation4 + $0x290] sm:$0xff]  ;;  %v428_v40 = vld [vmem:[#allocation4 + $0x288] sm:$0xff]  ;;  %v427_v41 = vld [vmem:[#allocation4 + $0x280] sm:$0xff] }
  0x2f   : > { %443 = vmatpush.msrb.mxu1 %v442_v62  ;;  %388 = vmatpush.msra.mxu3 %v367_v14  ;;  %v1017_v45 = vld [vmem:[%s1153_s2] ss:$0 sm:$0xff]  ;;  %v516_v46 = vld [vmem:[#allocation4 + $0x3f8] sm:$0xff]  ;;  %v515_v48 = vld [vmem:[#allocation4 + $0x3f0] sm:$0xff] }
  0x30   : > { %402 = vmatpush.msrb.mxu0 %v357_v63  ;;  %v497_v47 = vld [vmem:[#allocation4 + $0x378] sm:$0xff]  ;;  %517 = vmatpush.msrb.mxu2 %v516_v46  ;;  %v496_v50 = vld [vmem:[#allocation4 + $0x370] sm:$0xff]  ;;  %v514_v52 = vld [vmem:[#allocation4 + $0x3e8] sm:$0xff] }
  0x31   : > { %444 = vmatpush.msrb.mxu1 %v441_v1  ;;  %389 = vmatpush.msra.mxu3 %v366_v17  ;;  %v495_v53 = vld [vmem:[#allocation4 + $0x368] sm:$0xff]  ;;  %v513_v57 = vld [vmem:[#allocation4 + $0x3e0] sm:$0xff]  ;;  %v581_v11 = vld [vmem:[#allocation4 + $0x478] sm:$0xff] }
  0x32   : > { %403 = vmatpush.msrb.mxu0 %v356_v2  ;;  %518 = vmatpush.msrb.mxu2 %v515_v48  ;;  %v494_v58 = vld [vmem:[#allocation4 + $0x360] sm:$0xff]  ;;  %v508_v12 = vld [vmem:[#allocation4 + $0x3b8] sm:$0xff]  ;;  %v492_v13 = vld [vmem:[#allocation4 + $0x350] sm:$0xff] }
  0x33   : > { %445 = vmatpush.msrb.mxu1 %v440_v3  ;;  %390 = vmatpush.msra.mxu3 %v365_v20  ;;  %v580_v14 = vld [vmem:[#allocation4 + $0x470] sm:$0xff]  ;;  %v506_v20 = vld [vmem:[#allocation4 + $0x3a8] sm:$0xff] }
  0x34   : > { %324 = vmatmul.f32.gmra.mxu2 %v287_v4  ;;  %404 = vmatpush.msrb.mxu0 %v355_v5  ;;  %v507_v17 = vld [vmem:[#allocation4 + $0x3b0] sm:$0xff] }
  0x35   : > { %259 = vmatmul.f32.gmra.mxu0 %v222_v6  ;;  %446 = vmatpush.msrb.mxu1 %v439_v16  ;;  %v512_v6 = vld [vmem:[#allocation4 + $0x3d8] sm:$0xff]  ;;  %v579_v16 = vld [vmem:[#allocation4 + $0x468] sm:$0xff] }
  0x36   : > { %282 = vmatmul.f32.gmra.mxu1 %v204_v7  ;;  %405 = vmatpush.msrb.mxu0 %v354_v8  ;;  %v511_v7 = vld [vmem:[#allocation4 + $0x3d0] sm:$0xff]  ;;  %v510_v8 = vld [vmem:[#allocation4 + $0x3c8] sm:$0xff] }
  0x37   : > { %447 = vmatpush.msrb.mxu1 %v438_v19  ;;  %391 = vmatpush.msra.mxu3 %v364_v23  ;;  %v578_v19 = vld [vmem:[#allocation4 + $0x460] sm:$0xff]  ;;  %v577_v23 = vld [vmem:[#allocation4 + $0x458] sm:$0xff] }
  0x38   : > { %406 = vmatpush.msrb.mxu0 %v353_v9  ;;  %519 = vmatpush.msrb.mxu2 %v514_v52  ;;  %v509_v9 = vld [vmem:[#allocation4 + $0x3c0] sm:$0xff] }
  0x39   : > { %448 = vmatpush.msrb.mxu1 %v437_v22  ;;  %392 = vmatpush.msra.mxu3 %v363_v26  ;;  %v489_v22 = vld [vmem:[#allocation4 + $0x338] sm:$0xff]  ;;  %v576_v26 = vld [vmem:[#allocation4 + $0x450] sm:$0xff] }
  0x3a   : > { %407 = vmatpush.msrb.mxu0 %v352_v10  ;;  %520 = vmatpush.msrb.mxu2 %v513_v57  ;;  %v493_v10 = vld [vmem:[#allocation4 + $0x358] sm:$0xff]  ;;  %v652_v57 = vld [vmem:[#allocation4 + $0x568] sm:$0xff] }
  0x3b   : > { %449 = vmatpush.msrb.mxu1 %v436_v25  ;;  %393 = vmatpush.msra.mxu3 %v362_v29  ;;  %v488_v25 = vld [vmem:[#allocation4 + $0x330] sm:$0xff]  ;;  %v575_v29 = vld [vmem:[#allocation4 + $0x448] sm:$0xff] }
  0x3c   : > { %408 = vmatpush.msrb.mxu0 %v351_v15  ;;  %521 = vmatpush.msrb.mxu2 %v512_v6  ;;  %v491_v15 = vld [vmem:[#allocation4 + $0x348] sm:$0xff] }
  0x3d   : > { %450 = vmatpush.msrb.mxu1 %v435_v28  ;;  %540 = vmatpush.msrb.mxu3 %v497_v47  ;;  %v487_v28 = vld [vmem:[#allocation4 + $0x328] sm:$0xff] }
  0x3e   : > { %409 = vmatpush.msrb.mxu0 %v350_v18  ;;  %522 = vmatpush.msrb.mxu2 %v511_v7  ;;  %v490_v18 = vld [vmem:[#allocation4 + $0x340] sm:$0xff]  ;;  %v631_v7 = vld [vmem:[#allocation4 + $0x4d0] sm:$0xff] }
  0x3f   : > { %451 = vmatpush.msrb.mxu1 %v434_v31  ;;  %541 = vmatpush.msrb.mxu3 %v496_v50  ;;  %v486_v31 = vld [vmem:[#allocation4 + $0x320] sm:$0xff]  ;;  %v636_v50 = vld [vmem:[#allocation4 + $0x4f8] sm:$0xff] }
  0x40   : > { %410 = vmatpush.msrb.mxu0 %v349_v21  ;;  %523 = vmatpush.msrb.mxu2 %v510_v8  ;;  %v505_v21 = vld [vmem:[#allocation4 + $0x3a0] sm:$0xff] }
  0x41   : > { %452 = vmatpush.msrb.mxu1 %v433_v33  ;;  %542 = vmatpush.msrb.mxu3 %v495_v53  ;;  %v501_v33 = vld [vmem:[#allocation4 + $0x380] sm:$0xff]  ;;  %v654_v53 = vld [vmem:[#allocation4 + $0x578] sm:$0xff] }
  0x42   : > { %411 = vmatpush.msrb.mxu0 %v348_v24  ;;  %524 = vmatpush.msrb.mxu2 %v509_v9  ;;  %v504_v24 = vld [vmem:[#allocation4 + $0x398] sm:$0xff]  ;;  %v649_v9 = vld [vmem:[#allocation4 + $0x550] sm:$0xff] }
  0x43   : > { %453 = vmatpush.msrb.mxu1 %v432_v35  ;;  %543 = vmatpush.msrb.mxu3 %v494_v58  ;;  %v573_v35 = vld [vmem:[#allocation4 + $0x438] sm:$0xff] }
  0x44   : > { %412 = vmatpush.msrb.mxu0 %v347_v27  ;;  %525 = vmatpush.msrb.mxu2 %v508_v12  ;;  %v503_v27 = vld [vmem:[#allocation4 + $0x390] sm:$0xff]  ;;  %v648_v12 = vld [vmem:[#allocation4 + $0x548] sm:$0xff] }
  0x45   : > { %454 = vmatpush.msrb.mxu1 %v431_v37  ;;  %544 = vmatpush.msrb.mxu3 %v493_v10  ;;  %v572_v37 = vld [vmem:[#allocation4 + $0x430] sm:$0xff] }
  0x46   : > { %413 = vmatpush.msrb.mxu0 %v346_v30  ;;  %526 = vmatpush.msrb.mxu2 %v507_v17  ;;  %v502_v30 = vld [vmem:[#allocation4 + $0x388] sm:$0xff] }
  0x47   : > { %455 = vmatpush.msrb.mxu1 %v430_v38  ;;  %545 = vmatpush.msrb.mxu3 %v492_v13  ;;  %v483_v38 = vld [vmem:[#allocation4 + $0x308] sm:$0xff] }
  0x48   : > { %414 = vmatpush.msrb.mxu0 %v345_v32  ;;  %527 = vmatpush.msrb.mxu2 %v506_v20  ;;  %v574_v32 = vld [vmem:[#allocation4 + $0x440] sm:$0xff] }
  0x49   : > { %456 = vmatpush.msrb.mxu1 %v429_v39  ;;  %546 = vmatpush.msrb.mxu3 %v491_v15  ;;  %v571_v39 = vld [vmem:[#allocation4 + $0x428] sm:$0xff] }
  0x4a   : > { %415 = vmatpush.msrb.mxu0 %v344_v34  ;;  %528 = vmatpush.msrb.mxu2 %v505_v21  ;;  %v485_v34 = vld [vmem:[#allocation4 + $0x318] sm:$0xff] }
  0x4b   : > { %457 = vmatpush.msrb.mxu1 %v428_v40  ;;  %547 = vmatpush.msrb.mxu3 %v490_v18  ;;  %v482_v40 = vld [vmem:[#allocation4 + $0x300] sm:$0xff]  ;;  %v627_v18 = vld [vmem:[#allocation4 + $0x4b0] sm:$0xff] }
  0x4c   : > { %416 = vmatpush.msrb.mxu0 %v343_v36  ;;  %529 = vmatpush.msrb.mxu2 %v504_v24  ;;  %v484_v36 = vld [vmem:[#allocation4 + $0x310] sm:$0xff]  ;;  %v716_v24 = vld [vmem:[#allocation4 + $0x5e0] sm:$0xff] }
  0x4d   : > { %458 = vmatpush.msrb.mxu1 %v427_v41  ;;  %548 = vmatpush.msrb.mxu3 %v489_v22  ;;  %v570_v41 = vld [vmem:[#allocation4 + $0x420] sm:$0xff] }
  0x4e   : > { %582 = vmatpush.msra.mxu0 %v581_v11  ;;  %530 = vmatpush.msrb.mxu2 %v503_v27  ;;  %v630_v11 = vld [vmem:[#allocation4 + $0x4c8] sm:$0xff]  ;;  %v647_v22 = vld [vmem:[#allocation4 + $0x540] sm:$0xff]  ;;  %v715_v27 = vld [vmem:[#allocation4 + $0x5d8] sm:$0xff] }
  0x4f   : > { %549 = vmatpush.msrb.mxu3 %v488_v25  ;;  %655 = vmatpush.msra.mxu1 %v654_v53  ;;  %v646_v25 = vld [vmem:[#allocation4 + $0x538] sm:$0xff] }
  0x50   : > { %583 = vmatpush.msra.mxu0 %v580_v14  ;;  %531 = vmatpush.msrb.mxu2 %v502_v30  ;;  %v629_v14 = vld [vmem:[#allocation4 + $0x4c0] sm:$0xff]  ;;  %v714_v30 = vld [vmem:[#allocation4 + $0x5d0] sm:$0xff] }
  0x51   : > { %550 = vmatpush.msrb.mxu3 %v487_v28  ;;  %v645_v28 = vld [vmem:[#allocation4 + $0x530] sm:$0xff] }
  0x52   : > { %584 = vmatpush.msra.mxu0 %v579_v16  ;;  %532 = vmatpush.msrb.mxu2 %v501_v33  ;;  %v628_v16 = vld [vmem:[#allocation4 + $0x4b8] sm:$0xff]  ;;  %v713_v33 = vld [vmem:[#allocation4 + $0x5c8] sm:$0xff] }
  0x53   : > { %551 = vmatpush.msrb.mxu3 %v486_v31  ;;  %v644_v31 = vld [vmem:[#allocation4 + $0x528] sm:$0xff] }
  0x54   : > { %585 = vmatpush.msra.mxu0 %v578_v19  ;;  %678 = vmatpush.msra.mxu2 %v636_v50  ;;  %v626_v19 = vld [vmem:[#allocation4 + $0x4a8] sm:$0xff]  ;;  %v857_v50 = vld [vmem:[#allocation4 + $0x770] sm:$0xff] }
  0x55   : > { %552 = vmatpush.msrb.mxu3 %v485_v34  ;;  %v643_v34 = vld [vmem:[#allocation4 + $0x520] sm:$0xff] }
  0x56   : > { %586 = vmatpush.msra.mxu0 %v577_v23  ;;  %v625_v23 = vld [vmem:[#allocation4 + $0x4a0] sm:$0xff] }
  0x57   : > { %553 = vmatpush.msrb.mxu3 %v484_v36  ;;  %v712_v36 = vld [vmem:[#allocation4 + $0x5c0] sm:$0xff] }
  0x58   : > { %587 = vmatpush.msra.mxu0 %v576_v26  ;;  %v624_v26 = vld [vmem:[#allocation4 + $0x498] sm:$0xff] }
  0x59   : > { %554 = vmatpush.msrb.mxu3 %v483_v38  ;;  %v711_v38 = vld [vmem:[#allocation4 + $0x5b8] sm:$0xff] }
  0x5a   : > { %588 = vmatpush.msra.mxu0 %v575_v29  ;;  %v623_v29 = vld [vmem:[#allocation4 + $0x490] sm:$0xff] }
  0x5b   : > { %555 = vmatpush.msrb.mxu3 %v482_v40  ;;  %v710_v40 = vld [vmem:[#allocation4 + $0x5b0] sm:$0xff] }
  0x5c   : > { %589 = vmatpush.msra.mxu0 %v574_v32  ;;  %v622_v32 = vld [vmem:[#allocation4 + $0x488] sm:$0xff] }
  0x5e   : > { %590 = vmatpush.msra.mxu0 %v573_v35  ;;  %v621_v35 = vld [vmem:[#allocation4 + $0x480] sm:$0xff] }
  0x60   : > { %591 = vmatpush.msra.mxu0 %v572_v37  ;;  %v642_v37 = vld [vmem:[#allocation4 + $0x518] sm:$0xff] }
  0x62   : > { %592 = vmatpush.msra.mxu0 %v571_v39  ;;  %v641_v39 = vld [vmem:[#allocation4 + $0x510] sm:$0xff] }
  0x64   : > { %593 = vmatpush.msra.mxu0 %v570_v41  ;;  %v640_v41 = vld [vmem:[#allocation4 + $0x508] sm:$0xff] }
  0xaa   : > { %v257_v42 = vpop.f32.mrf.mxu0 }
  0xab   : > { %v280_v43 = vpop.f32.mrf.mxu1 }
  0xac   : > { %v281_v44 = vadd.f32 %v280_v43, %v257_v42  ;;  %v569_v42 = vld [vmem:[#allocation4 + $0x418] sm:$0xff]  ;;  %v568_v43 = vld [vmem:[#allocation4 + $0x410] sm:$0xff] }
  0xad   : > { %594 = vmatpush.msra.mxu0 %v569_v42  ;;  %v709_v42 = vld [vmem:[#allocation4 + $0x5a8] sm:$0xff] }
  0xaf   : > { %v322_v49 = vpop.f32.mrf.mxu2  ;;  %595 = vmatpush.msra.mxu0 %v568_v43  ;;  %v639_v43 = vld [vmem:[#allocation4 + $0x500] sm:$0xff] }
  0xb0   : > { %v328_v51 = vadd.f32 %v322_v49, %v281_v44  ;;  %v567_v44 = vld [vmem:[#allocation4 + $0x408] sm:$0xff]  ;;  %v1018_v49 = vld [vmem:[%s1153_s2 + $0x1] ss:$0 sm:$0xff] }
  0xb1   : > { %596 = vmatpush.msra.mxu0 %v567_v44  ;;  %v708_v44 = vld [vmem:[#allocation4 + $0x5a0] sm:$0xff] }
  0xb2   : > { %v334_v54 = vadd.f32 %v1017_v45, %v328_v51  ;;  %v260_v55 = vpop.f32.mrf.mxu0  ;;  %v635_v51 = vld [vmem:[#allocation4 + $0x4f0] sm:$0xff] }
  0xb3   : > { %v283_v56 = vpop.f32.mrf.mxu1  ;;  %679 = vmatpush.msra.mxu2 %v635_v51 }
  0xb4   : > { %v336_v59 = vmax.f32 %v334_v54, 0.0  ;;  %v284_v60 = vadd.f32 %v283_v56, %v260_v55  ;;  %v634_v55 = vld [vmem:[#allocation4 + $0x4e8] sm:$0xff]  ;;  %v653_v56 = vld [vmem:[#allocation4 + $0x570] sm:$0xff] }
  0xb5   : > { %656 = vmatpush.msra.mxu1 %v653_v56  ;;  %680 = vmatpush.msra.mxu2 %v634_v55 }
  0xb6   : > { %338 = vst [vmem:[#allocation3 + $0x10] sm:$0xff] %v336_v59  ;;  %394 = vmatmul.f32.vlgmr.msra.gmra.mxu3 %v336_v59  ;;  %v633_v59 = vld [vmem:[#allocation4 + $0x4e0] sm:$0xff] }
  0xb7   : > { %v325_v61 = vpop.f32.mrf.mxu2  ;;  %657 = vmatpush.msra.mxu1 %v652_v57  ;;  %681 = vmatpush.msra.mxu2 %v633_v59 }
  0xb8   : > { %v329_v62 = vadd.f32 %v325_v61, %v284_v60  ;;  %v719_v60 = vld [vmem:[#allocation4 + $0x5f8] sm:$0xff] }
  0xb9   : > { %720 = vmatpush.msra.mxu3 %v719_v60 }
  0xba   : > { %v335_v63 = vadd.f32 %v1017_v45, %v329_v62  ;;  %v566_v45 = vld [vmem:[#allocation4 + $0x400] sm:$0xff] }
  0xbb   : > { %597 = vmatpush.msra.mxu0 %v566_v45  ;;  %v651_v62 = vld [vmem:[#allocation4 + $0x560] sm:$0xff]  ;;  %v707_v45 = vld [vmem:[#allocation4 + $0x598] sm:$0xff] }
  0xbc   : > { %v337_v1 = vmax.f32 %v335_v63, 0.0  ;;  %v718_v63 = vld [vmem:[#allocation4 + $0x5f0] sm:$0xff]  ;;  %658 = vmatpush.msra.mxu1 %v651_v62 }
  0xbd   : > { %v340_v2 = vld [vmem:[#allocation3 + $0xe] sm:$0xff]  ;;  %721 = vmatpush.msra.mxu3 %v718_v63 }
  0xbe   : > { %339 = vst [vmem:[#allocation3 + $0x18] sm:$0xff] %v337_v1  ;;  %417 = vmatmul.f32.vlgmr.msrb.gmra.mxu0 %v340_v2  ;;  %397 = vmatmul.f32.gmra.mxu3 %v337_v1  ;;  %v632_v2 = vld [vmem:[#allocation4 + $0x4d8] sm:$0xff] }
  0xbf   : > { %682 = vmatpush.msra.mxu2 %v632_v2 }
  0xc1   : > { %683 = vmatpush.msra.mxu2 %v631_v7  ;;  %v773_v7 = vld [vmem:[#allocation4 + $0x670] sm:$0xff] }
  0xc3   : > { %684 = vmatpush.msra.mxu2 %v630_v11  ;;  %v854_v11 = vld [vmem:[#allocation4 + $0x758] sm:$0xff] }
  0xc5   : > { %v341_v3 = vld [vmem:[#allocation3 + $0x16] sm:$0xff]  ;;  %685 = vmatpush.msra.mxu2 %v629_v14  ;;  %v789_v14 = vld [vmem:[#allocation4 + $0x6d8] sm:$0xff] }
  0xc6   : > { %v424_v4 = vld [vmem:[#allocation3 + $0x12] sm:$0xff]  ;;  %420 = vmatmul.f32.gmra.mxu0 %v341_v3  ;;  %v425_v5 = vld [vmem:[#allocation3 + $0x1a] sm:$0xff] }
  0xc7   : > { %459 = vmatmul.f32.vlgmr.msrb.gmra.mxu1 %v424_v4  ;;  %v717_v3 = vld [vmem:[#allocation4 + $0x5e8] sm:$0xff]  ;;  %686 = vmatpush.msra.mxu2 %v628_v16 }
  0xc8   : > { %722 = vmatpush.msra.mxu3 %v717_v3  ;;  %v793_v3 = vld [vmem:[#allocation4 + $0x6f8] sm:$0xff]  ;;  %v852_v16 = vld [vmem:[#allocation4 + $0x748] sm:$0xff] }
  0xc9   : > { %687 = vmatpush.msra.mxu2 %v627_v18  ;;  %794 = vmatpush.msrb.mxu0 %v793_v3  ;;  %v769_v18 = vld [vmem:[#allocation4 + $0x650] sm:$0xff] }
  0xca   : > { %723 = vmatpush.msra.mxu3 %v716_v24  ;;  %v767_v24 = vld [vmem:[#allocation4 + $0x640] sm:$0xff] }
  0xcb   : > { %688 = vmatpush.msra.mxu2 %v626_v19  ;;  %v851_v19 = vld [vmem:[#allocation4 + $0x740] sm:$0xff] }
  0xcc   : > { %724 = vmatpush.msra.mxu3 %v715_v27  ;;  %v766_v27 = vld [vmem:[#allocation4 + $0x638] sm:$0xff] }
  0xcd   : > { %689 = vmatpush.msra.mxu2 %v625_v23  ;;  %v786_v23 = vld [vmem:[#allocation4 + $0x6c0] sm:$0xff] }
  0xce   : > { %725 = vmatpush.msra.mxu3 %v714_v30  ;;  %v765_v30 = vld [vmem:[#allocation4 + $0x630] sm:$0xff] }
  0xcf   : > { %462 = vmatmul.f32.gmra.mxu1 %v425_v5  ;;  %v650_v5 = vld [vmem:[#allocation4 + $0x558] sm:$0xff]  ;;  %690 = vmatpush.msra.mxu2 %v624_v26 }
  0xd0   : > { %659 = vmatpush.msra.mxu1 %v650_v5  ;;  %726 = vmatpush.msra.mxu3 %v713_v33  ;;  %v856_v5 = vld [vmem:[#allocation4 + $0x768] sm:$0xff]  ;;  %v785_v26 = vld [vmem:[#allocation4 + $0x6b8] sm:$0xff] }
  0xd1   : > { %691 = vmatpush.msra.mxu2 %v623_v29  ;;  %v784_v29 = vld [vmem:[#allocation4 + $0x6b0] sm:$0xff]  ;;  %v764_v33 = vld [vmem:[#allocation4 + $0x628] sm:$0xff] }
  0xd2   : > { %660 = vmatpush.msra.mxu1 %v649_v9  ;;  %727 = vmatpush.msra.mxu3 %v712_v36  ;;  %v791_v9 = vld [vmem:[#allocation4 + $0x6e8] sm:$0xff]  ;;  %v763_v36 = vld [vmem:[#allocation4 + $0x620] sm:$0xff] }
  0xd3   : > { %692 = vmatpush.msra.mxu2 %v622_v32  ;;  %v783_v32 = vld [vmem:[#allocation4 + $0x6a8] sm:$0xff] }
  0xd4   : > { %661 = vmatpush.msra.mxu1 %v648_v12  ;;  %728 = vmatpush.msra.mxu3 %v711_v38  ;;  %v771_v12 = vld [vmem:[#allocation4 + $0x660] sm:$0xff]  ;;  %v781_v38 = vld [vmem:[#allocation4 + $0x698] sm:$0xff] }
  0xd5   : > { %693 = vmatpush.msra.mxu2 %v621_v35  ;;  %v782_v35 = vld [vmem:[#allocation4 + $0x6a0] sm:$0xff] }
  0xd6   : > { %662 = vmatpush.msra.mxu1 %v647_v22  ;;  %729 = vmatpush.msra.mxu3 %v710_v40  ;;  %v850_v22 = vld [vmem:[#allocation4 + $0x738] sm:$0xff]  ;;  %v844_v40 = vld [vmem:[#allocation4 + $0x708] sm:$0xff] }
  0xd8   : > { %663 = vmatpush.msra.mxu1 %v646_v25  ;;  %730 = vmatpush.msra.mxu3 %v709_v42  ;;  %v849_v25 = vld [vmem:[#allocation4 + $0x730] sm:$0xff] }
  0xd9   : > { %v761_v42 = vld [vmem:[#allocation4 + $0x610] sm:$0xff] }
  0xda   : > { %664 = vmatpush.msra.mxu1 %v645_v28  ;;  %731 = vmatpush.msra.mxu3 %v708_v44  ;;  %v848_v28 = vld [vmem:[#allocation4 + $0x728] sm:$0xff] }
  0xdb   : > { %v779_v44 = vld [vmem:[#allocation4 + $0x688] sm:$0xff] }
  0xdc   : > { %665 = vmatpush.msra.mxu1 %v644_v31  ;;  %732 = vmatpush.msra.mxu3 %v707_v45  ;;  %v847_v31 = vld [vmem:[#allocation4 + $0x720] sm:$0xff]  ;;  %v760_v45 = vld [vmem:[#allocation4 + $0x608] sm:$0xff] }
  0xde   : > { %666 = vmatpush.msra.mxu1 %v643_v34  ;;  %v846_v34 = vld [vmem:[#allocation4 + $0x718] sm:$0xff] }
  0xe0   : > { %667 = vmatpush.msra.mxu1 %v642_v37  ;;  %v845_v37 = vld [vmem:[#allocation4 + $0x710] sm:$0xff] }
  0xe2   : > { %668 = vmatpush.msra.mxu1 %v641_v39  ;;  %v762_v39 = vld [vmem:[#allocation4 + $0x618] sm:$0xff] }
  0xe4   : > { %669 = vmatpush.msra.mxu1 %v640_v41  ;;  %v780_v41 = vld [vmem:[#allocation4 + $0x690] sm:$0xff] }
  0xe6   : > { %670 = vmatpush.msra.mxu1 %v639_v43  ;;  %v843_v43 = vld [vmem:[#allocation4 + $0x700] sm:$0xff] }
 0x139   : > { %v395_v47 = vpop.f32.mrf.mxu3 }
 0x13b   : > { %v418_v46 = vpop.f32.mrf.mxu0 }
 0x13c   : > { %v419_v48 = vadd.f32 %v418_v46, %v395_v47  ;;  %v706_v46 = vld [vmem:[#allocation4 + $0x590] sm:$0xff]  ;;  %v705_v47 = vld [vmem:[#allocation4 + $0x588] sm:$0xff] }
 0x13d   : > { %733 = vmatpush.msra.mxu3 %v706_v46  ;;  %v1022_v46 = vld [vmem:[#allocation3] sm:$0xff] }
 0x13f   : > { %734 = vmatpush.msra.mxu3 %v705_v47  ;;  %v778_v47 = vld [vmem:[#allocation4 + $0x680] sm:$0xff] }
 0x141   : > { %v398_v4 = vpop.f32.mrf.mxu3 }
 0x143   : > { %v421_v61 = vpop.f32.mrf.mxu0 }
 0x144   : > { %v460_v52 = vpop.f32.mrf.mxu1  ;;  %v422_v6 = vadd.f32 %v421_v61, %v398_v4  ;;  %v774_v4 = vld [vmem:[#allocation4 + $0x678] sm:$0xff] }
 0x145   : > { %v466_v54 = vadd.f32 %v460_v52, %v419_v48  ;;  %v704_v48 = vld [vmem:[#allocation4 + $0x580] sm:$0xff]  ;;  %817 = vmatpush.msrb.mxu1 %v774_v4 }
 0x146   : > { %735 = vmatpush.msra.mxu3 %v704_v48  ;;  %v759_v48 = vld [vmem:[#allocation4 + $0x600] sm:$0xff] }
 0x147   : > { %v473_v58 = vadd.f32 %v1018_v49, %v466_v54  ;;  %v1019_v54 = vld [vmem:[%s1153_s2 + $0x2] ss:$0 sm:$0xff]  ;;  %818 = vmatpush.msrb.mxu1 %v773_v7 }
 0x149   : > { %v475_v1 = vmax.f32 %v473_v58, 0.0 }
 0x14b   : > { %477 = vst [vmem:[#allocation2 + $0x10] sm:$0xff] %v475_v1  ;;  %533 = vmatmul.f32.vlgmr.msrb.gmra.mxu2 %v475_v1 }
 0x14c   : > { %v463_v8 = vpop.f32.mrf.mxu1 }
 0x14d   : > { %v467_v10 = vadd.f32 %v463_v8, %v422_v6  ;;  %v792_v6 = vld [vmem:[#allocation4 + $0x6f0] sm:$0xff]  ;;  %v855_v8 = vld [vmem:[#allocation4 + $0x760] sm:$0xff] }
 0x14e   : > { %795 = vmatpush.msrb.mxu0 %v792_v6 }
 0x14f   : > { %v474_v13 = vadd.f32 %v1018_v49, %v467_v10  ;;  %v858_v49 = vld [vmem:[#allocation4 + $0x778] sm:$0xff]  ;;  %v772_v10 = vld [vmem:[#allocation4 + $0x668] sm:$0xff] }
 0x150   : > { %859 = vmatpush.msrb.mxu2 %v858_v49  ;;  %796 = vmatpush.msrb.mxu0 %v791_v9 }
 0x151   : > { %v476_v15 = vmax.f32 %v474_v13, 0.0  ;;  %819 = vmatpush.msrb.mxu1 %v772_v10  ;;  %v853_v13 = vld [vmem:[#allocation4 + $0x750] sm:$0xff] }
 0x152   : > { %v479_v17 = vld [vmem:[#allocation2 + $0xc] sm:$0xff]  ;;  %860 = vmatpush.msrb.mxu2 %v857_v50 }
 0x153   : > { %478 = vst [vmem:[#allocation2 + $0x18] sm:$0xff] %v476_v15  ;;  %556 = vmatmul.f32.vlgmr.msrb.gmra.mxu3 %v479_v17  ;;  %536 = vmatmul.f32.gmra.mxu2 %v476_v15  ;;  %v770_v15 = vld [vmem:[#allocation4 + $0x658] sm:$0xff]  ;;  %v788_v17 = vld [vmem:[#allocation4 + $0x6d0] sm:$0xff] }
 0x154   : > { %861 = vmatpush.msrb.mxu2 %v856_v5  ;;  %979 = vmatpush.msrb.mxu3 %v793_v3  ;;  %v1021_v5 = vld [vmem:[%s1153_s2 + $0x4] ss:$0 sm:$0xff] }
 0x155   : > { %820 = vmatpush.msrb.mxu1 %v771_v12 }
 0x156   : > { %862 = vmatpush.msrb.mxu2 %v855_v8  ;;  %980 = vmatpush.msrb.mxu3 %v792_v6 }
 0x157   : > { %821 = vmatpush.msrb.mxu1 %v770_v15 }
 0x158   : > { %863 = vmatpush.msrb.mxu2 %v854_v11  ;;  %981 = vmatpush.msrb.mxu3 %v791_v9 }
 0x159   : > { %822 = vmatpush.msrb.mxu1 %v769_v18 }
 0x15a   : > { %v480_v20 = vld [vmem:[#allocation2 + $0x14] sm:$0xff]  ;;  %v564_v21 = vld [vmem:[#allocation2 + $0x1c] sm:$0xff]  ;;  %864 = vmatpush.msrb.mxu2 %v853_v13 }
 0x15b   : > { %559 = vmatmul.f32.gmra.mxu3 %v480_v20  ;;  %598 = vmatmul.f32.vlgmr.msra.gmra.mxu0 %v480_v20  ;;  %v787_v20 = vld [vmem:[#allocation4 + $0x6c8] sm:$0xff] }
 0x15c   : > { %694 = vmatmul.f32.vlgmr.msra.gmra.mxu2 %v1068_v0 }
 0x15d   : > { %865 = vmatpush.msrb.mxu2 %v852_v16 }
 0x15f   : > { %866 = vmatpush.msrb.mxu2 %v851_v19 }
 0x161   : > { %867 = vmatpush.msrb.mxu2 %v850_v22 }
 0x163   : > { %601 = vmatmul.f32.gmra.mxu0 %v564_v21  ;;  %v768_v21 = vld [vmem:[#allocation4 + $0x648] sm:$0xff]  ;;  %868 = vmatpush.msrb.mxu2 %v849_v25 }
 0x164   : > { %823 = vmatpush.msrb.mxu1 %v768_v21 }
 0x165   : > { %869 = vmatpush.msrb.mxu2 %v848_v28 }
 0x166   : > { %824 = vmatpush.msrb.mxu1 %v767_v24 }
 0x167   : > { %870 = vmatpush.msrb.mxu2 %v847_v31 }
 0x168   : > { %825 = vmatpush.msrb.mxu1 %v766_v27 }
 0x169   : > { %871 = vmatpush.msrb.mxu2 %v846_v34 }
 0x16a   : > { %826 = vmatpush.msrb.mxu1 %v765_v30 }
 0x16b   : > { %872 = vmatpush.msrb.mxu2 %v845_v37 }
 0x16c   : > { %827 = vmatpush.msrb.mxu1 %v764_v33 }
 0x16d   : > { %873 = vmatpush.msrb.mxu2 %v844_v40 }
 0x16e   : > { %828 = vmatpush.msrb.mxu1 %v763_v36 }
 0x16f   : > { %874 = vmatpush.msrb.mxu2 %v843_v43 }
 0x170   : > { %829 = vmatpush.msrb.mxu1 %v762_v39 }
 0x172   : > { %830 = vmatpush.msrb.mxu1 %v761_v42 }
 0x174   : > { %831 = vmatpush.msrb.mxu1 %v760_v45 }
 0x176   : > { %832 = vmatpush.msrb.mxu1 %v759_v48 }
 0x1ce   : > { %v534_v51 = vpop.f32.mrf.mxu2 }
 0x1d6   : > { %v557_v52 = vpop.f32.mrf.mxu3  ;;  %v537_v59 = vpop.f32.mrf.mxu2 }
 0x1d7   : > { %v558_v53 = vadd.f32 %v557_v52, %v534_v51  ;;  %v1020_v52 = vld [vmem:[%s1153_s2 + $0x3] ss:$0 sm:$0xff] }
 0x1d8   : > { %v599_v55 = vpop.f32.mrf.mxu0 }
 0x1d9   : > { %v605_v56 = vadd.f32 %v599_v55, %v558_v53 }
 0x1db   : > { %v612_v57 = vadd.f32 %v1019_v54, %v605_v56 }
 0x1dd   : > { %v614_v58 = vmax.f32 %v612_v57, 0.0 }
 0x1de   : > { %v560_v60 = vpop.f32.mrf.mxu3 }
 0x1df   : > { %616 = vst [vmem:[#allocation3 + $0x10] sm:$0xff] %v614_v58  ;;  %v561_v61 = vadd.f32 %v560_v60, %v537_v59  ;;  %671 = vmatmul.f32.vlgmr.msra.gmra.mxu1 %v614_v58  ;;  %697 = vmatmul.f32.gmra.mxu2 %v614_v58  ;;  %v695_v50 = vpop.f32.mrf.mxu2 }
 0x1e0   : > { %v602_v62 = vpop.f32.mrf.mxu0 }
 0x1e1   : > { %v606_v63 = vadd.f32 %v602_v62, %v561_v61 }
 0x1e3   : > { %v613_v1 = vadd.f32 %v1019_v54, %v606_v63 }
 0x1e5   : > { %v615_v2 = vmax.f32 %v613_v1, 0.0 }
 0x1e7   : > { %617 = vst [vmem:[#allocation3 + $0x18] sm:$0xff] %v615_v2  ;;  %674 = vmatmul.f32.gmra.mxu1 %v615_v2  ;;  %736 = vmatmul.f32.vlgmr.msra.gmra.mxu3 %v615_v2 }
 0x1e8   : > { %875 = vmatmul.f32.vlgmr.msrb.gmra.mxu2 %v1022_v46 }
 0x1ef   : > { %739 = vmatmul.f32.gmra.mxu3 %v1068_v0  ;;  %v790_v0 = vld [vmem:[#allocation4 + $0x6e0] sm:$0xff]  ;;  %833 = vmatmul.f32.vlgmr.msrb.gmra.mxu1 %v1022_v46 }
 0x1f0   : > { %797 = vmatpush.msrb.mxu0 %v790_v0  ;;  %982 = vmatpush.msrb.mxu3 %v790_v0 }
 0x1f1   : > { %878 = vmatmul.f32.gmra.mxu2 %v1022_v46 }
 0x1f2   : > { %798 = vmatpush.msrb.mxu0 %v789_v14  ;;  %983 = vmatpush.msrb.mxu3 %v789_v14 }
 0x1f4   : > { %799 = vmatpush.msrb.mxu0 %v788_v17  ;;  %984 = vmatpush.msrb.mxu3 %v788_v17 }
 0x1f6   : > { %800 = vmatpush.msrb.mxu0 %v787_v20  ;;  %985 = vmatpush.msrb.mxu3 %v787_v20 }
 0x1f7   : > { %836 = vmatmul.f32.gmra.mxu1 %v1022_v46 }
 0x1f8   : > { %801 = vmatpush.msrb.mxu0 %v786_v23  ;;  %986 = vmatpush.msrb.mxu3 %v786_v23 }
 0x1fa   : > { %802 = vmatpush.msrb.mxu0 %v785_v26  ;;  %987 = vmatpush.msrb.mxu3 %v785_v26 }
 0x1fc   : > { %803 = vmatpush.msrb.mxu0 %v784_v29  ;;  %988 = vmatpush.msrb.mxu3 %v784_v29 }
 0x1fe   : > { %804 = vmatpush.msrb.mxu0 %v783_v32  ;;  %989 = vmatpush.msrb.mxu3 %v783_v32 }
 0x200   : > { %805 = vmatpush.msrb.mxu0 %v782_v35  ;;  %990 = vmatpush.msrb.mxu3 %v782_v35 }
 0x202   : > { %806 = vmatpush.msrb.mxu0 %v781_v38  ;;  %991 = vmatpush.msrb.mxu3 %v781_v38 }
 0x204   : > { %807 = vmatpush.msrb.mxu0 %v780_v41  ;;  %992 = vmatpush.msrb.mxu3 %v780_v41 }
 0x206   : > { %808 = vmatpush.msrb.mxu0 %v779_v44  ;;  %993 = vmatpush.msrb.mxu3 %v779_v44 }
 0x208   : > { %809 = vmatpush.msrb.mxu0 %v778_v47  ;;  %994 = vmatpush.msrb.mxu3 %v778_v47 }
 0x25c   : > { %v672_v49 = vpop.f32.mrf.mxu1 }
 0x25d   : > { %v696_v51 = vadd.f32 %v695_v50, %v672_v49 }
 0x262   : > { %v698_v58 = vpop.f32.mrf.mxu2 }
 0x264   : > { %v675_v56 = vpop.f32.mrf.mxu1 }
 0x265   : > { %v699_v59 = vadd.f32 %v698_v58, %v675_v56 }
 0x26a   : > { %v737_v53 = vpop.f32.mrf.mxu3 }
 0x26b   : > { %v743_v54 = vadd.f32 %v737_v53, %v696_v51  ;;  %v876_v3 = vpop.f32.mrf.mxu2 }
 0x26c   : > { %v834_v1 = vpop.f32.mrf.mxu1 }
 0x26d   : > { %v750_v55 = vadd.f32 %v1020_v52, %v743_v54 }
 0x26f   : > { %v752_v57 = vmax.f32 %v750_v55, 0.0 }
 0x271   : > { %754 = vst [vmem:[#allocation2 + $0x10] sm:$0xff] %v752_v57  ;;  %810 = vmatmul.f32.vlgmr.msrb.gmra.mxu0 %v752_v57 }
 0x272   : > { %v740_v60 = vpop.f32.mrf.mxu3 }
 0x273   : > { %v744_v61 = vadd.f32 %v740_v60, %v699_v59 }
 0x274   : > { %v837_v8 = vpop.f32.mrf.mxu1  ;;  %v879_v10 = vpop.f32.mrf.mxu2 }
 0x275   : > { %v751_v62 = vadd.f32 %v1020_v52, %v744_v61 }
 0x277   : > { %v753_v63 = vmax.f32 %v751_v62, 0.0 }
 0x279   : > { %755 = vst [vmem:[#allocation2 + $0x18] sm:$0xff] %v753_v63  ;;  %813 = vmatmul.f32.vlgmr.msrb.gmra.mxu3 %v753_v63 }
 0x2ee   : > { %v811_v2 = vpop.f32.mrf.mxu0 }
 0x2ef   : > { %v835_v4 = vadd.f32 %v834_v1, %v811_v2 }
 0x2f1   : > { %v882_v6 = vadd.f32 %v876_v3, %v835_v4 }
 0x2f3   : > { %v889_v7 = vadd.f32 %v1021_v5, %v882_v6 }
 0x2f5   : > { %891 = vst.msk [vmem:[%s187_s10] sm:$0xff] %vm200_vm0, %v889_v7 }
 0x2fc   : > { %v814_v9 = vpop.f32.mrf.mxu3 }
 0x2fd   : > { %v838_v11 = vadd.f32 %v837_v8, %v814_v9 }
 0x2ff   : > { %v883_v0 = vadd.f32 %v879_v10, %v838_v11 }
 0x301   : > { %v890_v12 = vadd.f32 %v1021_v5, %v883_v0 }
 0x303   : > { %892 = vst.msk [vmem:[%s187_s10 + $0x8] sm:$0xff] %vm200_vm0, %v890_v12 }
 0x304 PF: > { %s14_s12 = sadd.s32 1, %s1063_s12  }
 0x305   : > { %p11_p7 = scmp.ge.s32.totalorder %s14_s12, 4  }
 0x307   :  { %13 = sbr.rel (!%p11_p7) target bundleno = 1 (0x1), region = 85 }
 0x30c   :  { %914 = vsyncpa [#allocation5], 1 }
 0x30d   :  { %916 = vsyncpa [#allocation5 + $0x1], 1 }

</bundles_post_ra>
